<compile_context>
chip_gen: v6e
topology: v6e:2x2x1
jax: 0.10.0
libtpu: 0.0.40
codegen_flags: <defaults>
</compile_context>

<pallas_src>
import functools

import jax
import jax.numpy as jnp
import numpy as np
from jax.experimental import pallas as pl
from jax.experimental.pallas import tpu as pltpu


def _lstm_kernel(x_ref,      # (T*Bp, I)  bf16   time-major, flattened, batch-padded
                 wih0_ref,   # (I, 4H)    bf16
                 whh0_ref,   # (H, 4H)    bf16
                 b0_ref,     # (1, 4H)    f32    (b_ih0 + b_hh0)
                 w1_ref,     # (2H, 4H)   bf16   [wih1^T ; whh1^T] fused
                 b1_ref,     # (1, 4H)    f32    (b_ih1 + b_hh1)
                 wfc_ref,    # (H, O)     bf16
                 bfc_ref,    # (1, O)     f32
                 out_ref,    # (Bp, O)    f32
                 xp_ref,     # (T, Bp, 4H) f32   VMEM scratch for hoisted projection
                 *, T, B):
    H = whh0_ref.shape[0]

    whh0 = whh0_ref[...]
    w1 = w1_ref[...]

    # ---- hoisted layer-0 input projection: one big matmul, bias folded in,
    #      materialized into VMEM scratch (bounds vreg pressure across the loop) ----
    xp_ref[...] = (jnp.dot(x_ref[...], wih0_ref[...],
                           preferred_element_type=jnp.float32)
                   + b0_ref[...]).reshape(T, B, 4 * H)

    # Hoist the layer-1 bias broadcast out of the recurrence.
    b1b = jnp.broadcast_to(b1_ref[...], (B, 4 * H))          # (Bp, 4H) f32

    # Lane mask selecting the 'g' gate slot (PyTorch gate order [i, f, g, o]).
    lane = jax.lax.broadcasted_iota(jnp.int32, (1, 4 * H), 1)
    g_mask = (lane >= 2 * H) & (lane < 3 * H)

    def cell(gates, c):
        # Full-vreg nonlinearities (EUP slot otherwise idle), combined by mask.
        sg = jax.nn.sigmoid(gates)
        th = jnp.tanh(gates)
        act = jnp.where(g_mask, th, sg)
        i_g = act[:, 0 * H:1 * H]
        f_g = act[:, 1 * H:2 * H]
        g_g = act[:, 2 * H:3 * H]
        o_g = act[:, 3 * H:4 * H]
        c_new = f_g * c + i_g * g_g
        h_new = o_g * jnp.tanh(c_new)
        return h_new.astype(jnp.bfloat16), c_new

    h0 = jnp.zeros((B, H), jnp.bfloat16)
    h1 = jnp.zeros((B, H), jnp.bfloat16)
    c0 = jnp.zeros((B, H), jnp.float32)
    c1 = jnp.zeros((B, H), jnp.float32)

    # ---- fused, skewed, fully unrolled recurrence ----
    # iteration t runs layer-0 cell at time t and layer-1 cell at time t-1.
    for t in range(T + 1):
        h0_prev = h0
        if t < T:
            g0 = xp_ref[t] + jnp.dot(h0, whh0,
                                     preferred_element_type=jnp.float32)
            h0, c0 = cell(g0, c0)
        if t >= 1:
            hcat = jnp.concatenate([h0_prev, h1], axis=1)     # (Bp, 2H) bf16
            g1 = jnp.dot(hcat, w1,
                         preferred_element_type=jnp.float32) + b1b
            h1, c1 = cell(g1, c1)

    # ---- final Linear on last timestep of the top layer ----
    out_ref[...] = (jnp.dot(h1, wfc_ref[...],
                            preferred_element_type=jnp.float32)
                    + bfc_ref[...])


def prepare_params(params):
    """One-time glue: transpose weights, fuse layer-1 weights & biases, cast to bf16."""
    (wih0, whh0, bih0, bhh0,
     wih1, whh1, bih1, bhh1,
     wfc, bfc) = params
    H = whh0.shape[1]
    O = wfc.shape[0]
    w1 = jnp.concatenate([jnp.transpose(wih1), jnp.transpose(whh1)],
                         axis=0).astype(jnp.bfloat16)              # (2H, 4H)
    return (
        jnp.transpose(wih0).astype(jnp.bfloat16),                  # (I, 4H)
        jnp.transpose(whh0).astype(jnp.bfloat16),                  # (H, 4H)
        (bih0 + bhh0).astype(jnp.float32).reshape(1, 4 * H),       # (1, 4H)
        w1,                                                        # (2H, 4H)
        (bih1 + bhh1).astype(jnp.float32).reshape(1, 4 * H),       # (1, 4H)
        jnp.transpose(wfc).astype(jnp.bfloat16),                   # (H, O)
        bfc.astype(jnp.float32).reshape(1, O),                     # (1, O)
    )


@jax.jit
def lstm_model_forward(x, prepared):
    """x: (B, T, I) batch-first float32.  Returns (B, O) float16 (PyTorch .half())."""
    wih0, whh0, b0, w1, b1, wfc, bfc = prepared
    B, T, I = x.shape
    H = whh0.shape[0]
    O = wfc.shape[1]

    # Pad batch to sublane granularity (8) so all state vregs are dense.
    Bp = max(8, ((B + 7) // 8) * 8)
    x_pad = jnp.pad(x, ((0, Bp - B), (0, 0), (0, 0)))

    # Time-major + flattened: row t*Bp + b is (time t, batch b).
    x_tm = jnp.transpose(x_pad, (1, 0, 2)).reshape(T * Bp, I).astype(jnp.bfloat16)

    vmem = pl.BlockSpec(memory_space=pltpu.MemorySpace.VMEM)
    kernel = functools.partial(_lstm_kernel, T=T, B=Bp)

    out = pl.pallas_call(
        kernel,
        out_shape=jax.ShapeDtypeStruct((Bp, O), jnp.float32),
        in_specs=[vmem] * 8,
        out_specs=vmem,
        scratch_shapes=[pltpu.VMEM((T, Bp, 4 * H), jnp.float32)],
    )(x_tm, wih0, whh0, b0, w1, b1, wfc, bfc)

    return out[:B].astype(jnp.float16)


def lstm_model_reference(x, params):
    """Pure-JAX float32 reference matching nn.LSTM(2 layers) + nn.Linear."""
    (wih0, whh0, bih0, bhh0,
     wih1, whh1, bih1, bhh1,
     wfc, bfc) = params
    B, T, _ = x.shape
    H = whh0.shape[1]

    def cell(x_t, h, c, wih, whh, b):
        gates = x_t @ wih.T + h @ whh.T + b
        i_g = jax.nn.sigmoid(gates[:, 0 * H:1 * H])
        f_g = jax.nn.sigmoid(gates[:, 1 * H:2 * H])
        g_g = jnp.tanh(gates[:, 2 * H:3 * H])
        o_g = jax.nn.sigmoid(gates[:, 3 * H:4 * H])
        c = f_g * c + i_g * g_g
        h = o_g * jnp.tanh(c)
        return h, c

    h0 = c0 = h1 = c1 = jnp.zeros((B, H), jnp.float32)
    for t in range(T):
        h0, c0 = cell(x[:, t, :], h0, c0, wih0, whh0, bih0 + bhh0)
        h1, c1 = cell(h0, h1, c1, wih1, whh1, bih1 + bhh1)
    return h1 @ wfc.T + bfc


def init_params(key, input_size, hidden_size, output_size):
    """Deterministic init mirroring nn.LSTM / nn.Linear shapes (uniform(-k, k), k=1/sqrt(H))."""
    H, I, O = hidden_size, input_size, output_size
    k = 1.0 / jnp.sqrt(jnp.float32(H))
    keys = jax.random.split(key, 10)
    u = lambda kk, shape: jax.random.uniform(kk, shape, jnp.float32, -k, k)
    wih0 = u(keys[0], (4 * H, I))
    whh0 = u(keys[1], (4 * H, H))
    bih0 = u(keys[2], (4 * H,))
    bhh0 = u(keys[3], (4 * H,))
    wih1 = u(keys[4], (4 * H, H))
    whh1 = u(keys[5], (4 * H, H))
    bih1 = u(keys[6], (4 * H,))
    bhh1 = u(keys[7], (4 * H,))
    wfc = u(keys[8], (O, H))
    bfc = u(keys[9], (O,))
    return (wih0, whh0, bih0, bhh0, wih1, whh1, bih1, bhh1, wfc, bfc)


if __name__ == "__main__":
    # Small shapes consistent with the module: input_size=6, 2 LSTM layers,
    # output_size=2; hidden shrunk to 32 for the synthetic run.
    B, T, I, H, O = 2, 8, 6, 32, 2

    key = jax.random.PRNGKey(0)
    k_x, k_p = jax.random.split(key)
    x = jax.random.normal(k_x, (B, T, I), jnp.float32)
    params = init_params(k_p, I, H, O)
    prepared = prepare_params(params)

    out = lstm_model_forward(x, prepared)
    out = jax.block_until_ready(out)

    assert out.shape == (B, O), out.shape
    assert out.dtype == jnp.float16, out.dtype

    ref = lstm_model_reference(x, params)
    np.testing.assert_allclose(np.asarray(out, dtype=np.float32),
                               np.asarray(ref), rtol=5e-2, atol=5e-2)
    print("KERNEL_OK")
</pallas_src>

<mosaic_0001>
module attributes {stable_mosaic.version = 11 : i64} {
  func.func @_lstm_kernel(%arg0: memref<64x6xbf16, #tpu.memory_space<vmem>>, %arg1: memref<6x128xbf16, #tpu.memory_space<vmem>>, %arg2: memref<32x128xbf16, #tpu.memory_space<vmem>>, %arg3: memref<1x128xf32, #tpu.memory_space<vmem>>, %arg4: memref<64x128xbf16, #tpu.memory_space<vmem>>, %arg5: memref<1x128xf32, #tpu.memory_space<vmem>>, %arg6: memref<32x2xbf16, #tpu.memory_space<vmem>>, %arg7: memref<1x2xf32, #tpu.memory_space<vmem>>, %arg8: memref<8x2xf32, #tpu.memory_space<vmem>>, %arg9: memref<8x8x128xf32, #tpu.memory_space<vmem>>) attributes {dimension_semantics = [], scalar_prefetch = 0 : i64, scratch_operands = 1 : i64, tpu.core_type = #tpu.core_type<tc>} {
    %c0 = arith.constant 0 : index
    %c0_0 = arith.constant 0 : index
    %0 = vector.load %arg2[%c0, %c0_0] : memref<32x128xbf16, #tpu.memory_space<vmem>>, vector<32x128xbf16>
    %c0_1 = arith.constant 0 : index
    %c0_2 = arith.constant 0 : index
    %1 = vector.load %arg4[%c0_1, %c0_2] : memref<64x128xbf16, #tpu.memory_space<vmem>>, vector<64x128xbf16>
    %c0_3 = arith.constant 0 : index
    %c0_4 = arith.constant 0 : index
    %2 = vector.load %arg0[%c0_3, %c0_4] : memref<64x6xbf16, #tpu.memory_space<vmem>>, vector<64x6xbf16>
    %c0_5 = arith.constant 0 : index
    %c0_6 = arith.constant 0 : index
    %3 = vector.load %arg1[%c0_5, %c0_6] : memref<6x128xbf16, #tpu.memory_space<vmem>>, vector<6x128xbf16>
    %cst = arith.constant dense<0.000000e+00> : vector<64x128xf32>
    %4 = tpu.matmul %2, %3, %cst {dimension_numbers = #tpu.dot_dimension_numbers<[1], [0], [0], [1], [0, 0, 1, 1], [], []>} : vector<64x6xbf16>, vector<6x128xbf16>, vector<64x128xf32> -> vector<64x128xf32>
    %c0_7 = arith.constant 0 : index
    %c0_8 = arith.constant 0 : index
    %5 = vector.load %arg3[%c0_7, %c0_8] : memref<1x128xf32, #tpu.memory_space<vmem>>, vector<1x128xf32>
    %6 = vector.broadcast %5 : vector<1x128xf32> to vector<64x128xf32>
    %7 = arith.addf %4, %6 : vector<64x128xf32>
    %8 = vector.shape_cast %7 : vector<64x128xf32> to vector<8x8x128xf32>
    %c0_9 = arith.constant 0 : index
    %c0_10 = arith.constant 0 : index
    %c0_11 = arith.constant 0 : index
    %9 = vector.load %arg9[%c0_9, %c0_10, %c0_11] : memref<8x8x128xf32, #tpu.memory_space<vmem>>, vector<8x8x128xf32>
    tpu.vector_store %arg9[%c0_9, %c0_10, %c0_11], %8 {strides = array<i32>} : memref<8x8x128xf32, #tpu.memory_space<vmem>>, vector<8x8x128xf32>,
    %c0_12 = arith.constant 0 : index
    %c0_13 = arith.constant 0 : index
    %10 = vector.load %arg5[%c0_12, %c0_13] : memref<1x128xf32, #tpu.memory_space<vmem>>, vector<1x128xf32>
    %11 = vector.shape_cast %10 : vector<1x128xf32> to vector<1x128xf32>
    %12 = vector.broadcast %11 : vector<1x128xf32> to vector<8x128xf32>
    %13 = tpu.iota {dimensions = array<i32: 1>} : vector<1x128xi32>
    %c64_i32 = arith.constant 64 : i32
    %14 = vector.broadcast %c64_i32 : i32 to vector<1x128xi32>
    %15 = arith.cmpi sge, %13, %14 : vector<1x128xi32>
    %c96_i32 = arith.constant 96 : i32
    %16 = vector.broadcast %c96_i32 : i32 to vector<1x128xi32>
    %17 = arith.cmpi slt, %13, %16 : vector<1x128xi32>
    %18 = arith.andi %15, %17 : vector<1x128xi1>
    %cst_14 = arith.constant 0.000000e+00 : bf16
    %19 = vector.broadcast %cst_14 : bf16 to vector<8x32xbf16>
    %cst_15 = arith.constant 0.000000e+00 : bf16
    %20 = vector.broadcast %cst_15 : bf16 to vector<8x32xbf16>
    %cst_16 = arith.constant 0.000000e+00 : f32
    %21 = vector.broadcast %cst_16 : f32 to vector<8x32xf32>
    %cst_17 = arith.constant 0.000000e+00 : f32
    %22 = vector.broadcast %cst_17 : f32 to vector<8x32xf32>
    %c0_18 = arith.constant 0 : index
    %c0_19 = arith.constant 0 : index
    %c0_20 = arith.constant 0 : index
    %23 = vector.load %arg9[%c0_18, %c0_19, %c0_20] : memref<8x8x128xf32, #tpu.memory_space<vmem>>, vector<1x8x128xf32>
    %24 = vector.shape_cast %23 : vector<1x8x128xf32> to vector<8x128xf32>
    %cst_21 = arith.constant dense<0.000000e+00> : vector<8x128xf32>
    %25 = tpu.matmul %19, %0, %cst_21 {dimension_numbers = #tpu.dot_dimension_numbers<[1], [0], [0], [1], [0, 0, 1, 1], [], []>} : vector<8x32xbf16>, vector<32x128xbf16>, vector<8x128xf32> -> vector<8x128xf32>
    %26 = arith.addf %24, %25 : vector<8x128xf32>
    %27 = arith.negf %26 : vector<8x128xf32>
    %28 = math.exp %27 : vector<8x128xf32>
    %cst_22 = arith.constant 1.000000e+00 : f32
    %29 = vector.broadcast %cst_22 : f32 to vector<8x128xf32>
    %30 = arith.addf %29, %28 : vector<8x128xf32>
    %31 = arith.divf %29, %30 : vector<8x128xf32>
    %32 = math.tanh %26 : vector<8x128xf32>
    %33 = vector.shape_cast %18 : vector<1x128xi1> to vector<1x128xi1>
    %34 = vector.broadcast %33 : vector<1x128xi1> to vector<8x128xi1>
    %35 = arith.select %34, %32, %31 : vector<8x128xi1>, vector<8x128xf32>
    %36 = vector.extract_strided_slice %35 {offsets = [0, 0], sizes = [8, 32], strides = [1, 1]} : vector<8x128xf32> to vector<8x32xf32>
    %37 = vector.extract_strided_slice %35 {offsets = [0, 32], sizes = [8, 32], strides = [1, 1]} : vector<8x128xf32> to vector<8x32xf32>
    %38 = vector.extract_strided_slice %35 {offsets = [0, 64], sizes = [8, 32], strides = [1, 1]} : vector<8x128xf32> to vector<8x32xf32>
    %39 = vector.extract_strided_slice %35 {offsets = [0, 96], sizes = [8, 32], strides = [1, 1]} : vector<8x128xf32> to vector<8x32xf32>
    %40 = arith.mulf %37, %21 : vector<8x32xf32>
    %41 = arith.mulf %36, %38 : vector<8x32xf32>
    %42 = arith.addf %40, %41 : vector<8x32xf32>
    %43 = math.tanh %42 : vector<8x32xf32>
    %44 = arith.mulf %39, %43 : vector<8x32xf32>
    %45 = arith.truncf %44 : vector<8x32xf32> to vector<8x32xbf16>
    %c1 = arith.constant 1 : index
    %c0_23 = arith.constant 0 : index
    %c0_24 = arith.constant 0 : index
    %46 = vector.load %arg9[%c1, %c0_23, %c0_24] : memref<8x8x128xf32, #tpu.memory_space<vmem>>, vector<1x8x128xf32>
    %47 = vector.shape_cast %46 : vector<1x8x128xf32> to vector<8x128xf32>
    %cst_25 = arith.constant dense<0.000000e+00> : vector<8x128xf32>
    %48 = tpu.matmul %45, %0, %cst_25 {dimension_numbers = #tpu.dot_dimension_numbers<[1], [0], [0], [1], [0, 0, 1, 1], [], []>} : vector<8x32xbf16>, vector<32x128xbf16>, vector<8x128xf32> -> vector<8x128xf32>
    %49 = arith.addf %47, %48 : vector<8x128xf32>
    %50 = arith.negf %49 : vector<8x128xf32>
    %51 = math.exp %50 : vector<8x128xf32>
    %cst_26 = arith.constant 1.000000e+00 : f32
    %52 = vector.broadcast %cst_26 : f32 to vector<8x128xf32>
    %53 = arith.addf %52, %51 : vector<8x128xf32>
    %54 = arith.divf %52, %53 : vector<8x128xf32>
    %55 = math.tanh %49 : vector<8x128xf32>
    %56 = vector.shape_cast %18 : vector<1x128xi1> to vector<1x128xi1>
    %57 = vector.broadcast %56 : vector<1x128xi1> to vector<8x128xi1>
    %58 = arith.select %57, %55, %54 : vector<8x128xi1>, vector<8x128xf32>
    %59 = vector.extract_strided_slice %58 {offsets = [0, 0], sizes = [8, 32], strides = [1, 1]} : vector<8x128xf32> to vector<8x32xf32>
    %60 = vector.extract_strided_slice %58 {offsets = [0, 32], sizes = [8, 32], strides = [1, 1]} : vector<8x128xf32> to vector<8x32xf32>
    %61 = vector.extract_strided_slice %58 {offsets = [0, 64], sizes = [8, 32], strides = [1, 1]} : vector<8x128xf32> to vector<8x32xf32>
    %62 = vector.extract_strided_slice %58 {offsets = [0, 96], sizes = [8, 32], strides = [1, 1]} : vector<8x128xf32> to vector<8x32xf32>
    %63 = arith.mulf %60, %42 : vector<8x32xf32>
    %64 = arith.mulf %59, %61 : vector<8x32xf32>
    %65 = arith.addf %63, %64 : vector<8x32xf32>
    %66 = math.tanh %65 : vector<8x32xf32>
    %67 = arith.mulf %62, %66 : vector<8x32xf32>
    %68 = arith.truncf %67 : vector<8x32xf32> to vector<8x32xbf16>
    %69 = tpu.concatenate %45, %20 in 1 : vector<8x32xbf16>, vector<8x32xbf16> -> vector<8x64xbf16>
    %cst_27 = arith.constant dense<0.000000e+00> : vector<8x128xf32>
    %70 = tpu.matmul %69, %1, %cst_27 {dimension_numbers = #tpu.dot_dimension_numbers<[1], [0], [0], [1], [0, 0, 1, 1], [], []>} : vector<8x64xbf16>, vector<64x128xbf16>, vector<8x128xf32> -> vector<8x128xf32>
    %71 = arith.addf %70, %12 : vector<8x128xf32>
    %72 = arith.negf %71 : vector<8x128xf32>
    %73 = math.exp %72 : vector<8x128xf32>
    %cst_28 = arith.constant 1.000000e+00 : f32
    %74 = vector.broadcast %cst_28 : f32 to vector<8x128xf32>
    %75 = arith.addf %74, %73 : vector<8x128xf32>
    %76 = arith.divf %74, %75 : vector<8x128xf32>
    %77 = math.tanh %71 : vector<8x128xf32>
    %78 = vector.shape_cast %18 : vector<1x128xi1> to vector<1x128xi1>
    %79 = vector.broadcast %78 : vector<1x128xi1> to vector<8x128xi1>
    %80 = arith.select %79, %77, %76 : vector<8x128xi1>, vector<8x128xf32>
    %81 = vector.extract_strided_slice %80 {offsets = [0, 0], sizes = [8, 32], strides = [1, 1]} : vector<8x128xf32> to vector<8x32xf32>
    %82 = vector.extract_strided_slice %80 {offsets = [0, 32], sizes = [8, 32], strides = [1, 1]} : vector<8x128xf32> to vector<8x32xf32>
    %83 = vector.extract_strided_slice %80 {offsets = [0, 64], sizes = [8, 32], strides = [1, 1]} : vector<8x128xf32> to vector<8x32xf32>
    %84 = vector.extract_strided_slice %80 {offsets = [0, 96], sizes = [8, 32], strides = [1, 1]} : vector<8x128xf32> to vector<8x32xf32>
    %85 = arith.mulf %82, %22 : vector<8x32xf32>
    %86 = arith.mulf %81, %83 : vector<8x32xf32>
    %87 = arith.addf %85, %86 : vector<8x32xf32>
    %88 = math.tanh %87 : vector<8x32xf32>
    %89 = arith.mulf %84, %88 : vector<8x32xf32>
    %90 = arith.truncf %89 : vector<8x32xf32> to vector<8x32xbf16>
    %c2 = arith.constant 2 : index
    %c0_29 = arith.constant 0 : index
    %c0_30 = arith.constant 0 : index
    %91 = vector.load %arg9[%c2, %c0_29, %c0_30] : memref<8x8x128xf32, #tpu.memory_space<vmem>>, vector<1x8x128xf32>
    %92 = vector.shape_cast %91 : vector<1x8x128xf32> to vector<8x128xf32>
    %cst_31 = arith.constant dense<0.000000e+00> : vector<8x128xf32>
    %93 = tpu.matmul %68, %0, %cst_31 {dimension_numbers = #tpu.dot_dimension_numbers<[1], [0], [0], [1], [0, 0, 1, 1], [], []>} : vector<8x32xbf16>, vector<32x128xbf16>, vector<8x128xf32> -> vector<8x128xf32>
    %94 = arith.addf %92, %93 : vector<8x128xf32>
    %95 = arith.negf %94 : vector<8x128xf32>
    %96 = math.exp %95 : vector<8x128xf32>
    %cst_32 = arith.constant 1.000000e+00 : f32
    %97 = vector.broadcast %cst_32 : f32 to vector<8x128xf32>
    %98 = arith.addf %97, %96 : vector<8x128xf32>
    %99 = arith.divf %97, %98 : vector<8x128xf32>
    %100 = math.tanh %94 : vector<8x128xf32>
    %101 = vector.shape_cast %18 : vector<1x128xi1> to vector<1x128xi1>
    %102 = vector.broadcast %101 : vector<1x128xi1> to vector<8x128xi1>
    %103 = arith.select %102, %100, %99 : vector<8x128xi1>, vector<8x128xf32>
    %104 = vector.extract_strided_slice %103 {offsets = [0, 0], sizes = [8, 32], strides = [1, 1]} : vector<8x128xf32> to vector<8x32xf32>
    %105 = vector.extract_strided_slice %103 {offsets = [0, 32], sizes = [8, 32], strides = [1, 1]} : vector<8x128xf32> to vector<8x32xf32>
    %106 = vector.extract_strided_slice %103 {offsets = [0, 64], sizes = [8, 32], strides = [1, 1]} : vector<8x128xf32> to vector<8x32xf32>
    %107 = vector.extract_strided_slice %103 {offsets = [0, 96], sizes = [8, 32], strides = [1, 1]} : vector<8x128xf32> to vector<8x32xf32>
    %108 = arith.mulf %105, %65 : vector<8x32xf32>
    %109 = arith.mulf %104, %106 : vector<8x32xf32>
    %110 = arith.addf %108, %109 : vector<8x32xf32>
    %111 = math.tanh %110 : vector<8x32xf32>
    %112 = arith.mulf %107, %111 : vector<8x32xf32>
    %113 = arith.truncf %112 : vector<8x32xf32> to vector<8x32xbf16>
    %114 = tpu.concatenate %68, %90 in 1 : vector<8x32xbf16>, vector<8x32xbf16> -> vector<8x64xbf16>
    %cst_33 = arith.constant dense<0.000000e+00> : vector<8x128xf32>
    %115 = tpu.matmul %114, %1, %cst_33 {dimension_numbers = #tpu.dot_dimension_numbers<[1], [0], [0], [1], [0, 0, 1, 1], [], []>} : vector<8x64xbf16>, vector<64x128xbf16>, vector<8x128xf32> -> vector<8x128xf32>
    %116 = arith.addf %115, %12 : vector<8x128xf32>
    %117 = arith.negf %116 : vector<8x128xf32>
    %118 = math.exp %117 : vector<8x128xf32>
    %cst_34 = arith.constant 1.000000e+00 : f32
    %119 = vector.broadcast %cst_34 : f32 to vector<8x128xf32>
    %120 = arith.addf %119, %118 : vector<8x128xf32>
    %121 = arith.divf %119, %120 : vector<8x128xf32>
    %122 = math.tanh %116 : vector<8x128xf32>
    %123 = vector.shape_cast %18 : vector<1x128xi1> to vector<1x128xi1>
    %124 = vector.broadcast %123 : vector<1x128xi1> to vector<8x128xi1>
    %125 = arith.select %124, %122, %121 : vector<8x128xi1>, vector<8x128xf32>
    %126 = vector.extract_strided_slice %125 {offsets = [0, 0], sizes = [8, 32], strides = [1, 1]} : vector<8x128xf32> to vector<8x32xf32>
    %127 = vector.extract_strided_slice %125 {offsets = [0, 32], sizes = [8, 32], strides = [1, 1]} : vector<8x128xf32> to vector<8x32xf32>
    %128 = vector.extract_strided_slice %125 {offsets = [0, 64], sizes = [8, 32], strides = [1, 1]} : vector<8x128xf32> to vector<8x32xf32>
    %129 = vector.extract_strided_slice %125 {offsets = [0, 96], sizes = [8, 32], strides = [1, 1]} : vector<8x128xf32> to vector<8x32xf32>
    %130 = arith.mulf %127, %87 : vector<8x32xf32>
    %131 = arith.mulf %126, %128 : vector<8x32xf32>
    %132 = arith.addf %130, %131 : vector<8x32xf32>
    %133 = math.tanh %132 : vector<8x32xf32>
    %134 = arith.mulf %129, %133 : vector<8x32xf32>
    %135 = arith.truncf %134 : vector<8x32xf32> to vector<8x32xbf16>
    %c3 = arith.constant 3 : index
    %c0_35 = arith.constant 0 : index
    %c0_36 = arith.constant 0 : index
    %136 = vector.load %arg9[%c3, %c0_35, %c0_36] : memref<8x8x128xf32, #tpu.memory_space<vmem>>, vector<1x8x128xf32>
    %137 = vector.shape_cast %136 : vector<1x8x128xf32> to vector<8x128xf32>
    %cst_37 = arith.constant dense<0.000000e+00> : vector<8x128xf32>
    %138 = tpu.matmul %113, %0, %cst_37 {dimension_numbers = #tpu.dot_dimension_numbers<[1], [0], [0], [1], [0, 0, 1, 1], [], []>} : vector<8x32xbf16>, vector<32x128xbf16>, vector<8x128xf32> -> vector<8x128xf32>
    %139 = arith.addf %137, %138 : vector<8x128xf32>
    %140 = arith.negf %139 : vector<8x128xf32>
    %141 = math.exp %140 : vector<8x128xf32>
    %cst_38 = arith.constant 1.000000e+00 : f32
    %142 = vector.broadcast %cst_38 : f32 to vector<8x128xf32>
    %143 = arith.addf %142, %141 : vector<8x128xf32>
    %144 = arith.divf %142, %143 : vector<8x128xf32>
    %145 = math.tanh %139 : vector<8x128xf32>
    %146 = vector.shape_cast %18 : vector<1x128xi1> to vector<1x128xi1>
    %147 = vector.broadcast %146 : vector<1x128xi1> to vector<8x128xi1>
    %148 = arith.select %147, %145, %144 : vector<8x128xi1>, vector<8x128xf32>
    %149 = vector.extract_strided_slice %148 {offsets = [0, 0], sizes = [8, 32], strides = [1, 1]} : vector<8x128xf32> to vector<8x32xf32>
    %150 = vector.extract_strided_slice %148 {offsets = [0, 32], sizes = [8, 32], strides = [1, 1]} : vector<8x128xf32> to vector<8x32xf32>
    %151 = vector.extract_strided_slice %148 {offsets = [0, 64], sizes = [8, 32], strides = [1, 1]} : vector<8x128xf32> to vector<8x32xf32>
    %152 = vector.extract_strided_slice %148 {offsets = [0, 96], sizes = [8, 32], strides = [1, 1]} : vector<8x128xf32> to vector<8x32xf32>
    %153 = arith.mulf %150, %110 : vector<8x32xf32>
    %154 = arith.mulf %149, %151 : vector<8x32xf32>
    %155 = arith.addf %153, %154 : vector<8x32xf32>
    %156 = math.tanh %155 : vector<8x32xf32>
    %157 = arith.mulf %152, %156 : vector<8x32xf32>
    %158 = arith.truncf %157 : vector<8x32xf32> to vector<8x32xbf16>
    %159 = tpu.concatenate %113, %135 in 1 : vector<8x32xbf16>, vector<8x32xbf16> -> vector<8x64xbf16>
    %cst_39 = arith.constant dense<0.000000e+00> : vector<8x128xf32>
    %160 = tpu.matmul %159, %1, %cst_39 {dimension_numbers = #tpu.dot_dimension_numbers<[1], [0], [0], [1], [0, 0, 1, 1], [], []>} : vector<8x64xbf16>, vector<64x128xbf16>, vector<8x128xf32> -> vector<8x128xf32>
    %161 = arith.addf %160, %12 : vector<8x128xf32>
    %162 = arith.negf %161 : vector<8x128xf32>
    %163 = math.exp %162 : vector<8x128xf32>
    %cst_40 = arith.constant 1.000000e+00 : f32
    %164 = vector.broadcast %cst_40 : f32 to vector<8x128xf32>
    %165 = arith.addf %164, %163 : vector<8x128xf32>
    %166 = arith.divf %164, %165 : vector<8x128xf32>
    %167 = math.tanh %161 : vector<8x128xf32>
    %168 = vector.shape_cast %18 : vector<1x128xi1> to vector<1x128xi1>
    %169 = vector.broadcast %168 : vector<1x128xi1> to vector<8x128xi1>
    %170 = arith.select %169, %167, %166 : vector<8x128xi1>, vector<8x128xf32>
    %171 = vector.extract_strided_slice %170 {offsets = [0, 0], sizes = [8, 32], strides = [1, 1]} : vector<8x128xf32> to vector<8x32xf32>
    %172 = vector.extract_strided_slice %170 {offsets = [0, 32], sizes = [8, 32], strides = [1, 1]} : vector<8x128xf32> to vector<8x32xf32>
    %173 = vector.extract_strided_slice %170 {offsets = [0, 64], sizes = [8, 32], strides = [1, 1]} : vector<8x128xf32> to vector<8x32xf32>
    %174 = vector.extract_strided_slice %170 {offsets = [0, 96], sizes = [8, 32], strides = [1, 1]} : vector<8x128xf32> to vector<8x32xf32>
    %175 = arith.mulf %172, %132 : vector<8x32xf32>
    %176 = arith.mulf %171, %173 : vector<8x32xf32>
    %177 = arith.addf %175, %176 : vector<8x32xf32>
    %178 = math.tanh %177 : vector<8x32xf32>
    %179 = arith.mulf %174, %178 : vector<8x32xf32>
    %180 = arith.truncf %179 : vector<8x32xf32> to vector<8x32xbf16>
    %c4 = arith.constant 4 : index
    %c0_41 = arith.constant 0 : index
    %c0_42 = arith.constant 0 : index
    %181 = vector.load %arg9[%c4, %c0_41, %c0_42] : memref<8x8x128xf32, #tpu.memory_space<vmem>>, vector<1x8x128xf32>
    %182 = vector.shape_cast %181 : vector<1x8x128xf32> to vector<8x128xf32>
    %cst_43 = arith.constant dense<0.000000e+00> : vector<8x128xf32>
    %183 = tpu.matmul %158, %0, %cst_43 {dimension_numbers = #tpu.dot_dimension_numbers<[1], [0], [0], [1], [0, 0, 1, 1], [], []>} : vector<8x32xbf16>, vector<32x128xbf16>, vector<8x128xf32> -> vector<8x128xf32>
    %184 = arith.addf %182, %183 : vector<8x128xf32>
    %185 = arith.negf %184 : vector<8x128xf32>
    %186 = math.exp %185 : vector<8x128xf32>
    %cst_44 = arith.constant 1.000000e+00 : f32
    %187 = vector.broadcast %cst_44 : f32 to vector<8x128xf32>
    %188 = arith.addf %187, %186 : vector<8x128xf32>
    %189 = arith.divf %187, %188 : vector<8x128xf32>
    %190 = math.tanh %184 : vector<8x128xf32>
    %191 = vector.shape_cast %18 : vector<1x128xi1> to vector<1x128xi1>
    %192 = vector.broadcast %191 : vector<1x128xi1> to vector<8x128xi1>
    %193 = arith.select %192, %190, %189 : vector<8x128xi1>, vector<8x128xf32>
    %194 = vector.extract_strided_slice %193 {offsets = [0, 0], sizes = [8, 32], strides = [1, 1]} : vector<8x128xf32> to vector<8x32xf32>
    %195 = vector.extract_strided_slice %193 {offsets = [0, 32], sizes = [8, 32], strides = [1, 1]} : vector<8x128xf32> to vector<8x32xf32>
    %196 = vector.extract_strided_slice %193 {offsets = [0, 64], sizes = [8, 32], strides = [1, 1]} : vector<8x128xf32> to vector<8x32xf32>
    %197 = vector.extract_strided_slice %193 {offsets = [0, 96], sizes = [8, 32], strides = [1, 1]} : vector<8x128xf32> to vector<8x32xf32>
    %198 = arith.mulf %195, %155 : vector<8x32xf32>
    %199 = arith.mulf %194, %196 : vector<8x32xf32>
    %200 = arith.addf %198, %199 : vector<8x32xf32>
    %201 = math.tanh %200 : vector<8x32xf32>
    %202 = arith.mulf %197, %201 : vector<8x32xf32>
    %203 = arith.truncf %202 : vector<8x32xf32> to vector<8x32xbf16>
    %204 = tpu.concatenate %158, %180 in 1 : vector<8x32xbf16>, vector<8x32xbf16> -> vector<8x64xbf16>
    %cst_45 = arith.constant dense<0.000000e+00> : vector<8x128xf32>
    %205 = tpu.matmul %204, %1, %cst_45 {dimension_numbers = #tpu.dot_dimension_numbers<[1], [0], [0], [1], [0, 0, 1, 1], [], []>} : vector<8x64xbf16>, vector<64x128xbf16>, vector<8x128xf32> -> vector<8x128xf32>
    %206 = arith.addf %205, %12 : vector<8x128xf32>
    %207 = arith.negf %206 : vector<8x128xf32>
    %208 = math.exp %207 : vector<8x128xf32>
    %cst_46 = arith.constant 1.000000e+00 : f32
    %209 = vector.broadcast %cst_46 : f32 to vector<8x128xf32>
    %210 = arith.addf %209, %208 : vector<8x128xf32>
    %211 = arith.divf %209, %210 : vector<8x128xf32>
    %212 = math.tanh %206 : vector<8x128xf32>
    %213 = vector.shape_cast %18 : vector<1x128xi1> to vector<1x128xi1>
    %214 = vector.broadcast %213 : vector<1x128xi1> to vector<8x128xi1>
    %215 = arith.select %214, %212, %211 : vector<8x128xi1>, vector<8x128xf32>
    %216 = vector.extract_strided_slice %215 {offsets = [0, 0], sizes = [8, 32], strides = [1, 1]} : vector<8x128xf32> to vector<8x32xf32>
    %217 = vector.extract_strided_slice %215 {offsets = [0, 32], sizes = [8, 32], strides = [1, 1]} : vector<8x128xf32> to vector<8x32xf32>
    %218 = vector.extract_strided_slice %215 {offsets = [0, 64], sizes = [8, 32], strides = [1, 1]} : vector<8x128xf32> to vector<8x32xf32>
    %219 = vector.extract_strided_slice %215 {offsets = [0, 96], sizes = [8, 32], strides = [1, 1]} : vector<8x128xf32> to vector<8x32xf32>
    %220 = arith.mulf %217, %177 : vector<8x32xf32>
    %221 = arith.mulf %216, %218 : vector<8x32xf32>
    %222 = arith.addf %220, %221 : vector<8x32xf32>
    %223 = math.tanh %222 : vector<8x32xf32>
    %224 = arith.mulf %219, %223 : vector<8x32xf32>
    %225 = arith.truncf %224 : vector<8x32xf32> to vector<8x32xbf16>
    %c5 = arith.constant 5 : index
    %c0_47 = arith.constant 0 : index
    %c0_48 = arith.constant 0 : index
    %226 = vector.load %arg9[%c5, %c0_47, %c0_48] : memref<8x8x128xf32, #tpu.memory_space<vmem>>, vector<1x8x128xf32>
    %227 = vector.shape_cast %226 : vector<1x8x128xf32> to vector<8x128xf32>
    %cst_49 = arith.constant dense<0.000000e+00> : vector<8x128xf32>
    %228 = tpu.matmul %203, %0, %cst_49 {dimension_numbers = #tpu.dot_dimension_numbers<[1], [0], [0], [1], [0, 0, 1, 1], [], []>} : vector<8x32xbf16>, vector<32x128xbf16>, vector<8x128xf32> -> vector<8x128xf32>
    %229 = arith.addf %227, %228 : vector<8x128xf32>
    %230 = arith.negf %229 : vector<8x128xf32>
    %231 = math.exp %230 : vector<8x128xf32>
    %cst_50 = arith.constant 1.000000e+00 : f32
    %232 = vector.broadcast %cst_50 : f32 to vector<8x128xf32>
    %233 = arith.addf %232, %231 : vector<8x128xf32>
    %234 = arith.divf %232, %233 : vector<8x128xf32>
    %235 = math.tanh %229 : vector<8x128xf32>
    %236 = vector.shape_cast %18 : vector<1x128xi1> to vector<1x128xi1>
    %237 = vector.broadcast %236 : vector<1x128xi1> to vector<8x128xi1>
    %238 = arith.select %237, %235, %234 : vector<8x128xi1>, vector<8x128xf32>
    %239 = vector.extract_strided_slice %238 {offsets = [0, 0], sizes = [8, 32], strides = [1, 1]} : vector<8x128xf32> to vector<8x32xf32>
    %240 = vector.extract_strided_slice %238 {offsets = [0, 32], sizes = [8, 32], strides = [1, 1]} : vector<8x128xf32> to vector<8x32xf32>
    %241 = vector.extract_strided_slice %238 {offsets = [0, 64], sizes = [8, 32], strides = [1, 1]} : vector<8x128xf32> to vector<8x32xf32>
    %242 = vector.extract_strided_slice %238 {offsets = [0, 96], sizes = [8, 32], strides = [1, 1]} : vector<8x128xf32> to vector<8x32xf32>
    %243 = arith.mulf %240, %200 : vector<8x32xf32>
    %244 = arith.mulf %239, %241 : vector<8x32xf32>
    %245 = arith.addf %243, %244 : vector<8x32xf32>
    %246 = math.tanh %245 : vector<8x32xf32>
    %247 = arith.mulf %242, %246 : vector<8x32xf32>
    %248 = arith.truncf %247 : vector<8x32xf32> to vector<8x32xbf16>
    %249 = tpu.concatenate %203, %225 in 1 : vector<8x32xbf16>, vector<8x32xbf16> -> vector<8x64xbf16>
    %cst_51 = arith.constant dense<0.000000e+00> : vector<8x128xf32>
    %250 = tpu.matmul %249, %1, %cst_51 {dimension_numbers = #tpu.dot_dimension_numbers<[1], [0], [0], [1], [0, 0, 1, 1], [], []>} : vector<8x64xbf16>, vector<64x128xbf16>, vector<8x128xf32> -> vector<8x128xf32>
    %251 = arith.addf %250, %12 : vector<8x128xf32>
    %252 = arith.negf %251 : vector<8x128xf32>
    %253 = math.exp %252 : vector<8x128xf32>
    %cst_52 = arith.constant 1.000000e+00 : f32
    %254 = vector.broadcast %cst_52 : f32 to vector<8x128xf32>
    %255 = arith.addf %254, %253 : vector<8x128xf32>
    %256 = arith.divf %254, %255 : vector<8x128xf32>
    %257 = math.tanh %251 : vector<8x128xf32>
    %258 = vector.shape_cast %18 : vector<1x128xi1> to vector<1x128xi1>
    %259 = vector.broadcast %258 : vector<1x128xi1> to vector<8x128xi1>
    %260 = arith.select %259, %257, %256 : vector<8x128xi1>, vector<8x128xf32>
    %261 = vector.extract_strided_slice %260 {offsets = [0, 0], sizes = [8, 32], strides = [1, 1]} : vector<8x128xf32> to vector<8x32xf32>
    %262 = vector.extract_strided_slice %260 {offsets = [0, 32], sizes = [8, 32], strides = [1, 1]} : vector<8x128xf32> to vector<8x32xf32>
    %263 = vector.extract_strided_slice %260 {offsets = [0, 64], sizes = [8, 32], strides = [1, 1]} : vector<8x128xf32> to vector<8x32xf32>
    %264 = vector.extract_strided_slice %260 {offsets = [0, 96], sizes = [8, 32], strides = [1, 1]} : vector<8x128xf32> to vector<8x32xf32>
    %265 = arith.mulf %262, %222 : vector<8x32xf32>
    %266 = arith.mulf %261, %263 : vector<8x32xf32>
    %267 = arith.addf %265, %266 : vector<8x32xf32>
    %268 = math.tanh %267 : vector<8x32xf32>
    %269 = arith.mulf %264, %268 : vector<8x32xf32>
    %270 = arith.truncf %269 : vector<8x32xf32> to vector<8x32xbf16>
    %c6 = arith.constant 6 : index
    %c0_53 = arith.constant 0 : index
    %c0_54 = arith.constant 0 : index
    %271 = vector.load %arg9[%c6, %c0_53, %c0_54] : memref<8x8x128xf32, #tpu.memory_space<vmem>>, vector<1x8x128xf32>
    %272 = vector.shape_cast %271 : vector<1x8x128xf32> to vector<8x128xf32>
    %cst_55 = arith.constant dense<0.000000e+00> : vector<8x128xf32>
    %273 = tpu.matmul %248, %0, %cst_55 {dimension_numbers = #tpu.dot_dimension_numbers<[1], [0], [0], [1], [0, 0, 1, 1], [], []>} : vector<8x32xbf16>, vector<32x128xbf16>, vector<8x128xf32> -> vector<8x128xf32>
    %274 = arith.addf %272, %273 : vector<8x128xf32>
    %275 = arith.negf %274 : vector<8x128xf32>
    %276 = math.exp %275 : vector<8x128xf32>
    %cst_56 = arith.constant 1.000000e+00 : f32
    %277 = vector.broadcast %cst_56 : f32 to vector<8x128xf32>
    %278 = arith.addf %277, %276 : vector<8x128xf32>
    %279 = arith.divf %277, %278 : vector<8x128xf32>
    %280 = math.tanh %274 : vector<8x128xf32>
    %281 = vector.shape_cast %18 : vector<1x128xi1> to vector<1x128xi1>
    %282 = vector.broadcast %281 : vector<1x128xi1> to vector<8x128xi1>
    %283 = arith.select %282, %280, %279 : vector<8x128xi1>, vector<8x128xf32>
    %284 = vector.extract_strided_slice %283 {offsets = [0, 0], sizes = [8, 32], strides = [1, 1]} : vector<8x128xf32> to vector<8x32xf32>
    %285 = vector.extract_strided_slice %283 {offsets = [0, 32], sizes = [8, 32], strides = [1, 1]} : vector<8x128xf32> to vector<8x32xf32>
    %286 = vector.extract_strided_slice %283 {offsets = [0, 64], sizes = [8, 32], strides = [1, 1]} : vector<8x128xf32> to vector<8x32xf32>
    %287 = vector.extract_strided_slice %283 {offsets = [0, 96], sizes = [8, 32], strides = [1, 1]} : vector<8x128xf32> to vector<8x32xf32>
    %288 = arith.mulf %285, %245 : vector<8x32xf32>
    %289 = arith.mulf %284, %286 : vector<8x32xf32>
    %290 = arith.addf %288, %289 : vector<8x32xf32>
    %291 = math.tanh %290 : vector<8x32xf32>
    %292 = arith.mulf %287, %291 : vector<8x32xf32>
    %293 = arith.truncf %292 : vector<8x32xf32> to vector<8x32xbf16>
    %294 = tpu.concatenate %248, %270 in 1 : vector<8x32xbf16>, vector<8x32xbf16> -> vector<8x64xbf16>
    %cst_57 = arith.constant dense<0.000000e+00> : vector<8x128xf32>
    %295 = tpu.matmul %294, %1, %cst_57 {dimension_numbers = #tpu.dot_dimension_numbers<[1], [0], [0], [1], [0, 0, 1, 1], [], []>} : vector<8x64xbf16>, vector<64x128xbf16>, vector<8x128xf32> -> vector<8x128xf32>
    %296 = arith.addf %295, %12 : vector<8x128xf32>
    %297 = arith.negf %296 : vector<8x128xf32>
    %298 = math.exp %297 : vector<8x128xf32>
    %cst_58 = arith.constant 1.000000e+00 : f32
    %299 = vector.broadcast %cst_58 : f32 to vector<8x128xf32>
    %300 = arith.addf %299, %298 : vector<8x128xf32>
    %301 = arith.divf %299, %300 : vector<8x128xf32>
    %302 = math.tanh %296 : vector<8x128xf32>
    %303 = vector.shape_cast %18 : vector<1x128xi1> to vector<1x128xi1>
    %304 = vector.broadcast %303 : vector<1x128xi1> to vector<8x128xi1>
    %305 = arith.select %304, %302, %301 : vector<8x128xi1>, vector<8x128xf32>
    %306 = vector.extract_strided_slice %305 {offsets = [0, 0], sizes = [8, 32], strides = [1, 1]} : vector<8x128xf32> to vector<8x32xf32>
    %307 = vector.extract_strided_slice %305 {offsets = [0, 32], sizes = [8, 32], strides = [1, 1]} : vector<8x128xf32> to vector<8x32xf32>
    %308 = vector.extract_strided_slice %305 {offsets = [0, 64], sizes = [8, 32], strides = [1, 1]} : vector<8x128xf32> to vector<8x32xf32>
    %309 = vector.extract_strided_slice %305 {offsets = [0, 96], sizes = [8, 32], strides = [1, 1]} : vector<8x128xf32> to vector<8x32xf32>
    %310 = arith.mulf %307, %267 : vector<8x32xf32>
    %311 = arith.mulf %306, %308 : vector<8x32xf32>
    %312 = arith.addf %310, %311 : vector<8x32xf32>
    %313 = math.tanh %312 : vector<8x32xf32>
    %314 = arith.mulf %309, %313 : vector<8x32xf32>
    %315 = arith.truncf %314 : vector<8x32xf32> to vector<8x32xbf16>
    %c7 = arith.constant 7 : index
    %c0_59 = arith.constant 0 : index
    %c0_60 = arith.constant 0 : index
    %316 = vector.load %arg9[%c7, %c0_59, %c0_60] : memref<8x8x128xf32, #tpu.memory_space<vmem>>, vector<1x8x128xf32>
    %317 = vector.shape_cast %316 : vector<1x8x128xf32> to vector<8x128xf32>
    %cst_61 = arith.constant dense<0.000000e+00> : vector<8x128xf32>
    %318 = tpu.matmul %293, %0, %cst_61 {dimension_numbers = #tpu.dot_dimension_numbers<[1], [0], [0], [1], [0, 0, 1, 1], [], []>} : vector<8x32xbf16>, vector<32x128xbf16>, vector<8x128xf32> -> vector<8x128xf32>
    %319 = arith.addf %317, %318 : vector<8x128xf32>
    %320 = arith.negf %319 : vector<8x128xf32>
    %321 = math.exp %320 : vector<8x128xf32>
    %cst_62 = arith.constant 1.000000e+00 : f32
    %322 = vector.broadcast %cst_62 : f32 to vector<8x128xf32>
    %323 = arith.addf %322, %321 : vector<8x128xf32>
    %324 = arith.divf %322, %323 : vector<8x128xf32>
    %325 = math.tanh %319 : vector<8x128xf32>
    %326 = vector.shape_cast %18 : vector<1x128xi1> to vector<1x128xi1>
    %327 = vector.broadcast %326 : vector<1x128xi1> to vector<8x128xi1>
    %328 = arith.select %327, %325, %324 : vector<8x128xi1>, vector<8x128xf32>
    %329 = vector.extract_strided_slice %328 {offsets = [0, 0], sizes = [8, 32], strides = [1, 1]} : vector<8x128xf32> to vector<8x32xf32>
    %330 = vector.extract_strided_slice %328 {offsets = [0, 32], sizes = [8, 32], strides = [1, 1]} : vector<8x128xf32> to vector<8x32xf32>
    %331 = vector.extract_strided_slice %328 {offsets = [0, 64], sizes = [8, 32], strides = [1, 1]} : vector<8x128xf32> to vector<8x32xf32>
    %332 = vector.extract_strided_slice %328 {offsets = [0, 96], sizes = [8, 32], strides = [1, 1]} : vector<8x128xf32> to vector<8x32xf32>
    %333 = arith.mulf %330, %290 : vector<8x32xf32>
    %334 = arith.mulf %329, %331 : vector<8x32xf32>
    %335 = arith.addf %333, %334 : vector<8x32xf32>
    %336 = math.tanh %335 : vector<8x32xf32>
    %337 = arith.mulf %332, %336 : vector<8x32xf32>
    %338 = arith.truncf %337 : vector<8x32xf32> to vector<8x32xbf16>
    %339 = tpu.concatenate %293, %315 in 1 : vector<8x32xbf16>, vector<8x32xbf16> -> vector<8x64xbf16>
    %cst_63 = arith.constant dense<0.000000e+00> : vector<8x128xf32>
    %340 = tpu.matmul %339, %1, %cst_63 {dimension_numbers = #tpu.dot_dimension_numbers<[1], [0], [0], [1], [0, 0, 1, 1], [], []>} : vector<8x64xbf16>, vector<64x128xbf16>, vector<8x128xf32> -> vector<8x128xf32>
    %341 = arith.addf %340, %12 : vector<8x128xf32>
    %342 = arith.negf %341 : vector<8x128xf32>
    %343 = math.exp %342 : vector<8x128xf32>
    %cst_64 = arith.constant 1.000000e+00 : f32
    %344 = vector.broadcast %cst_64 : f32 to vector<8x128xf32>
    %345 = arith.addf %344, %343 : vector<8x128xf32>
    %346 = arith.divf %344, %345 : vector<8x128xf32>
    %347 = math.tanh %341 : vector<8x128xf32>
    %348 = vector.shape_cast %18 : vector<1x128xi1> to vector<1x128xi1>
    %349 = vector.broadcast %348 : vector<1x128xi1> to vector<8x128xi1>
    %350 = arith.select %349, %347, %346 : vector<8x128xi1>, vector<8x128xf32>
    %351 = vector.extract_strided_slice %350 {offsets = [0, 0], sizes = [8, 32], strides = [1, 1]} : vector<8x128xf32> to vector<8x32xf32>
    %352 = vector.extract_strided_slice %350 {offsets = [0, 32], sizes = [8, 32], strides = [1, 1]} : vector<8x128xf32> to vector<8x32xf32>
    %353 = vector.extract_strided_slice %350 {offsets = [0, 64], sizes = [8, 32], strides = [1, 1]} : vector<8x128xf32> to vector<8x32xf32>
    %354 = vector.extract_strided_slice %350 {offsets = [0, 96], sizes = [8, 32], strides = [1, 1]} : vector<8x128xf32> to vector<8x32xf32>
    %355 = arith.mulf %352, %312 : vector<8x32xf32>
    %356 = arith.mulf %351, %353 : vector<8x32xf32>
    %357 = arith.addf %355, %356 : vector<8x32xf32>
    %358 = math.tanh %357 : vector<8x32xf32>
    %359 = arith.mulf %354, %358 : vector<8x32xf32>
    %360 = arith.truncf %359 : vector<8x32xf32> to vector<8x32xbf16>
    %361 = tpu.concatenate %338, %360 in 1 : vector<8x32xbf16>, vector<8x32xbf16> -> vector<8x64xbf16>
    %cst_65 = arith.constant dense<0.000000e+00> : vector<8x128xf32>
    %362 = tpu.matmul %361, %1, %cst_65 {dimension_numbers = #tpu.dot_dimension_numbers<[1], [0], [0], [1], [0, 0, 1, 1], [], []>} : vector<8x64xbf16>, vector<64x128xbf16>, vector<8x128xf32> -> vector<8x128xf32>
    %363 = arith.addf %362, %12 : vector<8x128xf32>
    %364 = arith.negf %363 : vector<8x128xf32>
    %365 = math.exp %364 : vector<8x128xf32>
    %cst_66 = arith.constant 1.000000e+00 : f32
    %366 = vector.broadcast %cst_66 : f32 to vector<8x128xf32>
    %367 = arith.addf %366, %365 : vector<8x128xf32>
    %368 = arith.divf %366, %367 : vector<8x128xf32>
    %369 = math.tanh %363 : vector<8x128xf32>
    %370 = vector.shape_cast %18 : vector<1x128xi1> to vector<1x128xi1>
    %371 = vector.broadcast %370 : vector<1x128xi1> to vector<8x128xi1>
    %372 = arith.select %371, %369, %368 : vector<8x128xi1>, vector<8x128xf32>
    %373 = vector.extract_strided_slice %372 {offsets = [0, 0], sizes = [8, 32], strides = [1, 1]} : vector<8x128xf32> to vector<8x32xf32>
    %374 = vector.extract_strided_slice %372 {offsets = [0, 32], sizes = [8, 32], strides = [1, 1]} : vector<8x128xf32> to vector<8x32xf32>
    %375 = vector.extract_strided_slice %372 {offsets = [0, 64], sizes = [8, 32], strides = [1, 1]} : vector<8x128xf32> to vector<8x32xf32>
    %376 = vector.extract_strided_slice %372 {offsets = [0, 96], sizes = [8, 32], strides = [1, 1]} : vector<8x128xf32> to vector<8x32xf32>
    %377 = arith.mulf %374, %357 : vector<8x32xf32>
    %378 = arith.mulf %373, %375 : vector<8x32xf32>
    %379 = arith.addf %377, %378 : vector<8x32xf32>
    %380 = math.tanh %379 : vector<8x32xf32>
    %381 = arith.mulf %376, %380 : vector<8x32xf32>
    %382 = arith.truncf %381 : vector<8x32xf32> to vector<8x32xbf16>
    %c0_67 = arith.constant 0 : index
    %c0_68 = arith.constant 0 : index
    %383 = vector.load %arg6[%c0_67, %c0_68] : memref<32x2xbf16, #tpu.memory_space<vmem>>, vector<32x2xbf16>
    %cst_69 = arith.constant dense<0.000000e+00> : vector<8x2xf32>
    %384 = tpu.matmul %382, %383, %cst_69 {dimension_numbers = #tpu.dot_dimension_numbers<[1], [0], [0], [1], [0, 0, 1, 1], [], []>} : vector<8x32xbf16>, vector<32x2xbf16>, vector<8x2xf32> -> vector<8x2xf32>
    %c0_70 = arith.constant 0 : index
    %c0_71 = arith.constant 0 : index
    %385 = vector.load %arg7[%c0_70, %c0_71] : memref<1x2xf32, #tpu.memory_space<vmem>>, vector<1x2xf32>
    %386 = vector.broadcast %385 : vector<1x2xf32> to vector<8x2xf32>
    %387 = arith.addf %384, %386 : vector<8x2xf32>
    %c0_72 = arith.constant 0 : index
    %c0_73 = arith.constant 0 : index
    %388 = vector.load %arg8[%c0_72, %c0_73] : memref<8x2xf32, #tpu.memory_space<vmem>>, vector<8x2xf32>
    tpu.vector_store %arg8[%c0_72, %c0_73], %387 {strides = array<i32>} : memref<8x2xf32, #tpu.memory_space<vmem>>, vector<8x2xf32>,
    return
  }
}

</mosaic_0001>

<bundles_post_ra>
// kernel: lstm_model_forward.1
= control target key start
LH: loop header
LB: loop body
LE: loop exit
PB: predicated region body
PF: predicated region fallthrough
CT: control target
= control target key end

     0   :  { %vm91_vm0 = vcmask 1042432   ;;  %vm78_vm1 = vcmask 48128   ;;  %v1924_v1 = vmov 0.0   ;;  %vm1925_vm2 = vmmov 0   ;;  %s1927_s15 = smov 64   ;;  %s1928_s16 = smov 32   ;;  %s2391_s1 = inlined_call_operand.vmem [shape: bf16[6,128], index: 1, kind: input, shape index: {}]   ;;  %s2392_s2 = inlined_call_operand.vmem [shape: bf16[32,128], index: 2, kind: input, shape index: {}]   ;;  %s2393_s0 = inlined_call_operand.vmem [shape: bf16[64,6], index: 0, kind: input, shape index: {}]   ;;  %s2394_s3 = inlined_call_operand.vmem [shape: f32[1,128], index: 3, kind: input, shape index: {}]   ;;  %s2395_s4 = inlined_call_operand.vmem [shape: bf16[64,128], index: 4, kind: input, shape index: {}]   ;;  %s2396_s5 = inlined_call_operand.vmem [shape: f32[1,128], index: 5, kind: input, shape index: {}]   ;;  %s2397_s6 = inlined_call_operand.vmem [shape: bf16[32,2], index: 6, kind: input, shape index: {}]   ;;  %s2398_s7 = inlined_call_operand.vmem [shape: f32[1,2], index: 7, kind: input, shape index: {}]   ;;  %s2399_s8 = inlined_call_operand.vmem [shape: f32[8,2], index: 8, kind: output, shape index: {}]  }
   0x1   :  { %v50_v0 = vld [vmem:[%s2391_s1] sm:$0x7]  ;;  %1608 = vmatprep.subr.bf16.mxu1 %v1924_v1  ;;  %1612 = vmatprep.mubr.msk.bf16.mxu1 %vm1925_vm2, %v1924_v1  ;;  %v1983_v3 = vld [vmem:[%s2392_s2 + $0x8] sm:$0xff]   ;;  %v1926_v7 = vmov 0   ;;  %v175_v20 = vlaneseq  ;;  %v1788_v31 = vld [vmem:[%s2393_s0 + $0x10] sm:$0xff]   ;;  %vm193_vm6 = vcmask 261120  }
   0x2   :  { %1776 = vmatprep.subr.msk.bf16.mxu0 %vm91_vm0, %v50_v0  ;;  %v93_v2 = vsel %vm91_vm0, %v50_v0, 0  ;;  %v1783_v4 = vld [vmem:[%s2393_s0] sm:$0xff]   ;;  %1609 = vmatpush3.bf16.msra.mxu1 %v1983_v3  ;;  %v1784_v5 = vld [vmem:[%s2393_s0 + $0x8] sm:$0xff]   ;;  %v1789_v32 = vld [vmem:[%s2393_s0 + $0x18] sm:$0xff]   ;;  %vm366_vm7 = vcmask 523264   ;;  %vm1469_vm8 = vcmask 15360  }
   0x3   :  { %1599 = vmatpush3.bf16.msra.mxu0 %v93_v2  ;;  %1600 = vmatprep.mubr.msk.bf16.mxu0 %vm78_vm1, %v1783_v4  ;;  %v1998_v6 = vld [vmem:[%s2392_s2] sm:$0xff]   ;;  %v176_v21 = vand.u32 127, %v175_v20  ;;  %v2037_v33 = vld [vmem:[%s2395_s4 + $0x18] sm:$0xff]   ;;  %v2044_v34 = vld [vmem:[%s2395_s4 + $0x10] sm:$0xff]  }
   0x4   :  { %1624 = vmatprep.subr.bf16.mxu0 %v1924_v1  ;;  %1610 = vmatprep.subr.bf16.mxu1 %v1924_v1  ;;  %v2014_v9 = vld [vmem:[%s2394_s3] ss:$0 sm:$0xff]  ;;  %v2054_v35 = vld [vmem:[%s2395_s4 + $0x8] sm:$0xff]  }
   0x5   :  { %vm177_vm3 = vcmp.ge.s32.totalorder %v176_v21, 64  ;;  %vm178_vm4 = vcmp.lt.s32.totalorder %v176_v21, 96  ;;  %v2062_v37 = vld [vmem:[%s2395_s4] sm:$0xff]  }
   0x6   :  { %1601 = vmatmul.mubr.msk.bf16.vlgmr.msra.gmra.mxu0 %vm78_vm1, %v1784_v5  ;;  %1611 = vmatpush3.bf16.msra.mxu1 %v1998_v6  ;;  %vm2017_vm5 = vmand %vm177_vm3, %vm178_vm4  ;;  %v2101_v50 = vld [vmem:[%s2396_s5] ss:$0 sm:$0xff] }
   0x7   :  { %1616 = vmatprep.subr.bf16.mxu1 %v1924_v1  ;;  %1604 = vmatprep.mubr.msk.bf16.mxu0 %vm78_vm1, %v1788_v31  ;;  %v1793_v22 = vld [vmem:[%s2397_s6] sm:$0xff]  }
   0x8   :  { %1625 = vmatpush3.bf16.msra.mxu0 %v2037_v33 }
   0x9   :  { %1613 = vmatmul.mubr.bf16.vlgmr.msra.gmra.mxu1 %v1926_v7  ;;  %1626 = vmatprep.subr.bf16.mxu0 %v1924_v1 }
   0xa   :  { %1617 = vmatpush3.bf16.msra.mxu1 %v1983_v3  ;;  %1620 = vmatprep.mubr.msk.bf16.mxu1 %vm1925_vm2, %v1924_v1 }
   0xb   :  { %1618 = vmatprep.subr.bf16.mxu1 %v1924_v1 }
   0xc   :  { %1627 = vmatpush3.bf16.msra.mxu0 %v2044_v34 }
   0xd   :  { %1628 = vmatprep.subr.bf16.mxu0 %v1924_v1 }
   0xe   :  { %1619 = vmatpush3.bf16.msra.mxu1 %v1998_v6  ;;  %1605 = vmatmul.mubr.msk.bf16.gmra.mxu0 %vm78_vm1, %v1789_v32 }
   0xf   :  { %1636 = vmatprep.subr.bf16.mxu1 %v1924_v1  ;;  %1632 = vmatprep.mubr.msk.bf16.mxu0 %vm1925_vm2, %v1924_v1 }
  0x10   :  { %1629 = vmatpush3.bf16.msra.mxu0 %v2054_v35 }
  0x11   :  { %1630 = vmatprep.subr.bf16.mxu0 %v1924_v1 }
  0x14   :  { %1631 = vmatpush3.bf16.msra.mxu0 %v2062_v37 }
  0x15   :  { %1644 = vmatprep.subr.bf16.mxu0 %v1924_v1 }
  0xc6   :  { %v2009_v8 = vpop.f32.mrf.mxu0 }
  0xc8   :  { %v129_v10 = vpop.f32.mrf.mxu0 }
  0xc9   :  { %v130_v11 = vadd.f32 %v2014_v9, %v129_v10  ;;  %v231_v12 = vpop.f32.mrf.mxu1 }
  0xca   :  { %v2087_v43 = vpop.f32.mrf.mxu0 }
  0xcb   :  { %v237_v13 = vadd.f32 %v231_v12, %v130_v11  ;;  %v1614_v14 = vpop.f32.mrf.mxu1 }
  0xcc   :  { %v132_v44 = vpop.f32.mrf.mxu0 }
  0xcd   :  { %v1487_v15 = vmul.f32 -1.442695, %v237_v13  ;;  %v234_v16 = vpop.f32.mrf.mxu1  ;;  %v133_v49 = vadd.f32 %v2014_v9, %v132_v44 }
  0xce   :  { %v2089_v45 = vpop.f32.mrf.mxu0 }
  0xcf   :  { %1794 = vpow2.f32 %v1487_v15  ;;  %v1615_v17 = vpop.f32.mrf.mxu1 }
  0xd0   :  { %1796 = vtanh.f32 %v237_v13  ;;  %v2091_v46 = vpop.f32.mrf.mxu0 }
  0xd2   :  { %v2093_v47 = vpop.f32.mrf.mxu0 }
  0xd4   :  { %v2095_v48 = vpop.f32.mrf.mxu0 }
  0xdc   :  { %v1795_v18 = vpop.eup %1794 }
  0xdd   :  { %v241_v19 = vadd.f32 1.0, %v1795_v18  ;;  %v1797_v23 = vpop.eup %1796 }
  0xdf   :  { %1798 = vrcp.f32 %v241_v19 }
  0xec   :  { %v1799_v24 = vpop.eup %1798 }
  0xed   :  { %v247_v25 = vsel %vm2017_vm5, %v1797_v23, %v1799_v24 }
  0xee   :  { %250 = vrot.lane.b32.xlu0 %v247_v25, %s1927_s15  ;;  %v248_v28 = vmul.f32 0.0, %v247_v25 }
 0x160   :  { %v251_v26 = vpop.permute.xlu0 %250 }
 0x161   :  { %v253_v27 = vmul.f32 %v251_v26, %v247_v25 }
 0x163   :  { %255 = vrot.lane.b32.xlu0 %v253_v27, %s1928_s16 }
 0x1d5   :  { %v256_v29 = vpop.permute.xlu0 %255 }
 0x1d6   :  { %v2025_v30 = vadd.f32 %v256_v29, %v248_v28 }
 0x1d8   :  { %1800 = vtanh.f32 %v2025_v30 }
 0x1e5   :  { %v1801_v36 = vpop.eup %1800 }
 0x1e6   :  { %261 = vrot.lane.b32.xlu1 %v1801_v36, %s1927_s15 }
 0x258   :  { %v262_v38 = vpop.permute.xlu1 %261 }
 0x259   :  { %v264_v39 = vmul.f32 %v262_v38, %v247_v25 }
 0x25b   :  { %v265_v40 = vpack.c.bf16 %v264_v39, %v264_v39 }
 0x25d   :  { %269 = vrot.lane.b32.xlu1 %v265_v40, %s1928_s16  ;;  %v138_v40 = vadd.f32 %v2009_v8, %v2014_v9 }
 0x2cf   :  { %v270_v41 = vpop.permute.xlu1 %269 }
 0x2d0   :  { %v341_v42 = vsel %vm193_vm6, %v270_v41, 0  ;;  %1621 = vmatmul.mubr.msk.bf16.vlgmr.msra.gmra.mxu1 %vm193_vm6, %v270_v41 }
 0x2d1   :  { %1633 = vmatmul.mubr.msk.bf16.vlgmr.msra.gmra.mxu0 %vm366_vm7, %v341_v42  ;;  %1637 = vmatpush3.bf16.msra.mxu1 %v1983_v3 }
 0x2d2   :  { %1645 = vmatpush3.bf16.msra.mxu0 %v2037_v33  ;;  %1638 = vmatprep.subr.bf16.mxu1 %v1924_v1 }
 0x2d3   :  { %1646 = vmatprep.subr.bf16.mxu0 %v1924_v1  ;;  %1640 = vmatprep.mubr.msk.bf16.mxu1 %vm1925_vm2, %v1924_v1 }
 0x2d4   :  { %1652 = vmatprep.mubr.msk.bf16.mxu0 %vm1925_vm2, %v1924_v1 }
 0x2d5   :  { %1639 = vmatpush3.bf16.msra.mxu1 %v1998_v6 }
 0x2d6   :  { %1647 = vmatpush3.bf16.msra.mxu0 %v2044_v34  ;;  %1656 = vmatprep.subr.bf16.mxu1 %v1924_v1 }
 0x2d7   :  { %1648 = vmatprep.subr.bf16.mxu0 %v1924_v1 }
 0x2da   :  { %1649 = vmatpush3.bf16.msra.mxu0 %v2054_v35 }
 0x2db   :  { %1650 = vmatprep.subr.bf16.mxu0 %v1924_v1 }
 0x2de   :  { %1651 = vmatpush3.bf16.msra.mxu0 %v2062_v37 }
 0x2df   :  { %1676 = vmatprep.subr.bf16.mxu0 %v1924_v1 }
 0x390   :  { %v308_v51 = vpop.f32.mrf.mxu1 }
 0x391   :  { %v314_v52 = vadd.f32 %v308_v51, %v133_v49  ;;  %v403_v53 = vpop.f32.mrf.mxu0 }
 0x392   :  { %v404_v54 = vadd.f32 %v2101_v50, %v403_v53  ;;  %v1622_v55 = vpop.f32.mrf.mxu1 }
 0x393   :  { %v1489_v56 = vmul.f32 -1.442695, %v314_v52  ;;  %v1634_v57 = vpop.f32.mrf.mxu0 }
 0x394   :  { %v1495_v58 = vmul.f32 -1.442695, %v404_v54  ;;  %v311_v59 = vpop.f32.mrf.mxu1 }
 0x395   :  { %1802 = vpow2.f32 %v1489_v56  ;;  %v406_v60 = vpop.f32.mrf.mxu0 }
 0x396   :  { %1804 = vpow2.f32 %v1495_v58  ;;  %v1623_v61 = vpop.f32.mrf.mxu1 }
 0x397   :  { %v1635_v62 = vpop.f32.mrf.mxu0  ;;  %1806 = vtanh.f32 %v314_v52 }
 0x398   :  { %1808 = vtanh.f32 %v404_v54 }
 0x3a2   :  { %v1803_v63 = vpop.eup %1802 }
 0x3a3   :  { %v1805_v0 = vpop.eup %1804  ;;  %v318_v2 = vadd.f32 1.0, %v1803_v63 }
 0x3a4   :  { %v412_v4 = vadd.f32 1.0, %v1805_v0  ;;  %v1807_v5 = vpop.eup %1806 }
 0x3a5   :  { %1810 = vrcp.f32 %v318_v2  ;;  %v1809_v7 = vpop.eup %1808 }
 0x3a6   :  { %1812 = vrcp.f32 %v412_v4 }
 0x3b2   :  { %v1811_v10 = vpop.eup %1810 }
 0x3b3   :  { %v1813_v11 = vpop.eup %1812  ;;  %v322_v12 = vsel %vm2017_vm5, %v1807_v5, %v1811_v10 }
 0x3b4   :  { %325 = vrot.lane.b32.xlu0 %v322_v12, %s1927_s15  ;;  %v416_v13 = vsel %vm2017_vm5, %v1809_v7, %v1813_v11  ;;  %v323_v18 = vmul.f32 %v322_v12, %v2025_v30 }
 0x3b5   :  { %419 = vrot.lane.b32.xlu1 %v416_v13, %s1927_s15  ;;  %v417_v20 = vmul.f32 0.0, %v416_v13 }
 0x426   :  { %v326_v14 = vpop.permute.xlu0 %325 }
 0x427   :  { %v328_v15 = vmul.f32 %v326_v14, %v322_v12  ;;  %v420_v16 = vpop.permute.xlu1 %419 }
 0x428   :  { %v422_v17 = vmul.f32 %v420_v16, %v416_v13 }
 0x429   :  { %330 = vrot.lane.b32.xlu0 %v328_v15, %s1928_s16 }
 0x42a   :  { %424 = vrot.lane.b32.xlu1 %v422_v17, %s1928_s16 }
 0x49b   :  { %v331_v19 = vpop.permute.xlu0 %330 }
 0x49c   :  { %v2113_v21 = vadd.f32 %v331_v19, %v323_v18  ;;  %v425_v23 = vpop.permute.xlu1 %424 }
 0x49d   :  { %v2115_v24 = vadd.f32 %v425_v23, %v417_v20 }
 0x49e   :  { %1814 = vtanh.f32 %v2113_v21 }
 0x49f   :  { %1816 = vtanh.f32 %v2115_v24 }
 0x4ab   :  { %v1815_v25 = vpop.eup %1814 }
 0x4ac   :  { %v1817_v26 = vpop.eup %1816  ;;  %336 = vrot.lane.b32.xlu0 %v1815_v25, %s1927_s15 }
 0x4ad   :  { %430 = vrot.lane.b32.xlu1 %v1817_v26, %s1927_s15 }
 0x51e   :  { %v337_v27 = vpop.permute.xlu0 %336 }
 0x51f   :  { %v339_v28 = vmul.f32 %v337_v27, %v322_v12  ;;  %v431_v29 = vpop.permute.xlu1 %430 }
 0x520   :  { %v433_v30 = vmul.f32 %v431_v29, %v416_v13 }
 0x521   :  { %v340_v31 = vpack.c.bf16 %v339_v28, %v339_v28 }
 0x522   :  { %v434_v32 = vpack.c.bf16 %v433_v30, %v433_v30 }
 0x523   :  { %438 = vrot.lane.b32.xlu0 %v340_v31, %s1928_s16  ;;  %v141_v31 = vadd.f32 %v2087_v43, %v2014_v9 }
 0x524   :  { %511 = vrot.lane.b32.xlu1 %v434_v32, %s1927_s15 }
 0x595   :  { %v439_v36 = vpop.permute.xlu0 %438 }
 0x596   :  { %1641 = vmatmul.mubr.msk.bf16.vlgmr.msra.gmra.mxu1 %vm193_vm6, %v439_v36  ;;  %v512_v38 = vpop.permute.xlu1 %511 }
 0x597   :  { %v514_v39 = vsel %vm193_vm6, %v439_v36, %v512_v38  ;;  %1657 = vmatpush3.bf16.msra.mxu1 %v1983_v3  ;;  %1660 = vmatprep.mubr.msk.bf16.mxu1 %vm1925_vm2, %v1924_v1 }
 0x598   :  { %1653 = vmatmul.mubr.msk.bf16.vlgmr.msra.gmra.mxu0 %vm366_vm7, %v514_v39  ;;  %1658 = vmatprep.subr.bf16.mxu1 %v1924_v1 }
 0x599   :  { %1677 = vmatpush3.bf16.msra.mxu0 %v1983_v3  ;;  %1680 = vmatprep.mubr.msk.bf16.mxu0 %vm1925_vm2, %v1924_v1 }
 0x59a   :  { %1678 = vmatprep.subr.bf16.mxu0 %v1924_v1 }
 0x59b   :  { %1659 = vmatpush3.bf16.msra.mxu1 %v1998_v6 }
 0x59c   :  { %1664 = vmatprep.subr.bf16.mxu1 %v1924_v1 }
 0x59d   :  { %1679 = vmatpush3.bf16.msra.mxu0 %v1998_v6 }
 0x59e   :  { %1684 = vmatprep.subr.bf16.mxu0 %v1924_v1 }
 0x656   :  { %v477_v41 = vpop.f32.mrf.mxu1 }
 0x657   :  { %v483_v42 = vadd.f32 %v477_v41, %v138_v40 }
 0x658   :  { %v1642_v44 = vpop.f32.mrf.mxu1  ;;  %v551_v49 = vpop.f32.mrf.mxu0 }
 0x659   :  { %v1497_v51 = vmul.f32 -1.442695, %v483_v42  ;;  %v552_v52 = vadd.f32 %v2101_v50, %v551_v49 }
 0x65a   :  { %v480_v53 = vpop.f32.mrf.mxu1  ;;  %v1654_v54 = vpop.f32.mrf.mxu0 }
 0x65b   :  { %1818 = vpow2.f32 %v1497_v51  ;;  %v1499_v55 = vmul.f32 -1.442695, %v552_v52 }
 0x65c   :  { %v1643_v56 = vpop.f32.mrf.mxu1  ;;  %v554_v57 = vpop.f32.mrf.mxu0 }
 0x65d   :  { %1820 = vpow2.f32 %v1499_v55 }
 0x65e   :  { %v1655_v58 = vpop.f32.mrf.mxu0  ;;  %1822 = vtanh.f32 %v483_v42 }
 0x668   :  { %v1819_v59 = vpop.eup %1818 }
 0x669   :  { %v487_v60 = vadd.f32 1.0, %v1819_v59 }
 0x66a   :  { %v1821_v61 = vpop.eup %1820 }
 0x66b   :  { %1824 = vrcp.f32 %v487_v60  ;;  %v560_v8 = vadd.f32 1.0, %v1821_v61  ;;  %v1823_v62 = vpop.eup %1822 }
 0x66c   :  { %1826 = vtanh.f32 %v552_v52 }
 0x66d   :  { %1828 = vrcp.f32 %v560_v8 }
 0x678   :  { %v1825_v63 = vpop.eup %1824 }
 0x679   :  { %v1827_v0 = vpop.eup %1826  ;;  %v491_v2 = vsel %vm2017_vm5, %v1823_v62, %v1825_v63 }
 0x67a   :  { %v1829_v4 = vpop.eup %1828  ;;  %494 = vrot.lane.b32.xlu0 %v491_v2, %s1927_s15  ;;  %v492_v13 = vmul.f32 %v491_v2, %v2113_v21 }
 0x67b   :  { %v564_v5 = vsel %vm2017_vm5, %v1827_v0, %v1829_v4 }
 0x67c   :  { %567 = vrot.lane.b32.xlu1 %v564_v5, %s1927_s15  ;;  %v565_v16 = vmul.f32 %v564_v5, %v2115_v24 }
 0x6ec   :  { %v495_v7 = vpop.permute.xlu0 %494 }
 0x6ed   :  { %v497_v10 = vmul.f32 %v495_v7, %v491_v2 }
 0x6ee   :  { %v568_v11 = vpop.permute.xlu1 %567 }
 0x6ef   :  { %v570_v12 = vmul.f32 %v568_v11, %v564_v5  ;;  %499 = vrot.lane.b32.xlu0 %v497_v10, %s1928_s16 }
 0x6f1   :  { %572 = vrot.lane.b32.xlu1 %v570_v12, %s1928_s16 }
 0x761   :  { %v500_v14 = vpop.permute.xlu0 %499 }
 0x762   :  { %v2150_v15 = vadd.f32 %v500_v14, %v492_v13 }
 0x763   :  { %v573_v17 = vpop.permute.xlu1 %572 }
 0x764   :  { %1830 = vtanh.f32 %v2150_v15  ;;  %v2154_v18 = vadd.f32 %v573_v17, %v565_v16 }
 0x766   :  { %1832 = vtanh.f32 %v2154_v18 }
 0x771   :  { %v1831_v19 = vpop.eup %1830 }
 0x772   :  { %505 = vrot.lane.b32.xlu0 %v1831_v19, %s1927_s15 }
 0x773   :  { %v1833_v20 = vpop.eup %1832 }
 0x774   :  { %578 = vrot.lane.b32.xlu1 %v1833_v20, %s1927_s15 }
 0x7e4   :  { %v506_v23 = vpop.permute.xlu0 %505 }
 0x7e5   :  { %v508_v21 = vmul.f32 %v506_v23, %v491_v2 }
 0x7e6   :  { %v579_v25 = vpop.permute.xlu1 %578 }
 0x7e7   :  { %v509_v26 = vpack.c.bf16 %v508_v21, %v508_v21  ;;  %v581_v27 = vmul.f32 %v579_v25, %v564_v5 }
 0x7e9   :  { %v582_v28 = vpack.c.bf16 %v581_v27, %v581_v27  ;;  %586 = vrot.lane.b32.xlu0 %v509_v26, %s1928_s16  ;;  %v146_v26 = vadd.f32 %v2014_v9, %v2091_v46 }
 0x7eb   :  { %659 = vrot.lane.b32.xlu1 %v582_v28, %s1927_s15 }
 0x85b   :  { %v587_v24 = vpop.permute.xlu0 %586 }
 0x85c   :  { %1661 = vmatmul.mubr.msk.bf16.vlgmr.msra.gmra.mxu1 %vm193_vm6, %v587_v24 }
 0x85d   :  { %1665 = vmatpush3.bf16.msra.mxu1 %v2037_v33  ;;  %1672 = vmatprep.mubr.msk.bf16.mxu1 %vm1925_vm2, %v1924_v1  ;;  %v660_v29 = vpop.permute.xlu1 %659 }
 0x85e   :  { %1666 = vmatprep.subr.bf16.mxu1 %v1924_v1  ;;  %v662_v30 = vsel %vm193_vm6, %v587_v24, %v660_v29 }
 0x861   :  { %1667 = vmatpush3.bf16.msra.mxu1 %v2044_v34 }
 0x862   :  { %1668 = vmatprep.subr.bf16.mxu1 %v1924_v1 }
 0x865   :  { %1669 = vmatpush3.bf16.msra.mxu1 %v2054_v35 }
 0x866   :  { %1670 = vmatprep.subr.bf16.mxu1 %v1924_v1 }
 0x869   :  { %1671 = vmatpush3.bf16.msra.mxu1 %v2062_v37 }
 0x86a   :  { %1696 = vmatprep.subr.bf16.mxu1 %v1924_v1 }
 0x86c   :  { %1673 = vmatmul.mubr.msk.bf16.vlgmr.msra.gmra.mxu1 %vm366_vm7, %v662_v30 }
 0x86d   :  { %1697 = vmatpush3.bf16.msra.mxu1 %v1983_v3  ;;  %1700 = vmatprep.mubr.msk.bf16.mxu1 %vm1925_vm2, %v1924_v1 }
 0x86e   :  { %1698 = vmatprep.subr.bf16.mxu1 %v1924_v1 }
 0x871   :  { %1699 = vmatpush3.bf16.msra.mxu1 %v1998_v6 }
 0x872   :  { %1704 = vmatprep.subr.bf16.mxu1 %v1924_v1 }
 0x91c   :  { %v625_v32 = vpop.f32.mrf.mxu1 }
 0x91d   :  { %v631_v36 = vadd.f32 %v625_v32, %v141_v31 }
 0x91e   :  { %v1662_v38 = vpop.f32.mrf.mxu1 }
 0x91f   :  { %v1501_v39 = vmul.f32 -1.442695, %v631_v36 }
 0x920   :  { %v628_v40 = vpop.f32.mrf.mxu1 }
 0x921   :  { %1834 = vpow2.f32 %v1501_v39 }
 0x922   :  { %v1663_v41 = vpop.f32.mrf.mxu1  ;;  %1836 = vtanh.f32 %v631_v36 }
 0x92c   :  { %v699_v42 = vpop.f32.mrf.mxu1 }
 0x92d   :  { %v700_v44 = vadd.f32 %v2101_v50, %v699_v42 }
 0x92e   :  { %v1835_v49 = vpop.eup %1834  ;;  %v1674_v51 = vpop.f32.mrf.mxu1 }
 0x92f   :  { %v635_v52 = vadd.f32 1.0, %v1835_v49  ;;  %v1503_v53 = vmul.f32 -1.442695, %v700_v44  ;;  %v1837_v43 = vpop.eup %1836 }
 0x930   :  { %v702_v54 = vpop.f32.mrf.mxu1 }
 0x931   :  { %1838 = vrcp.f32 %v635_v52 }
 0x932   :  { %1840 = vpow2.f32 %v1503_v53  ;;  %v1675_v55 = vpop.f32.mrf.mxu1 }
 0x933   :  { %1842 = vtanh.f32 %v700_v44 }
 0x93e   :  { %v1839_v56 = vpop.eup %1838 }
 0x93f   :  { %v1841_v57 = vpop.eup %1840  ;;  %v639_v58 = vsel %vm2017_vm5, %v1837_v43, %v1839_v56 }
 0x940   :  { %v708_v59 = vadd.f32 1.0, %v1841_v57  ;;  %642 = vrot.lane.b32.xlu0 %v639_v58, %s1927_s15  ;;  %v1843_v60 = vpop.eup %1842  ;;  %v640_v4 = vmul.f32 %v639_v58, %v2150_v15 }
 0x942   :  { %1844 = vrcp.f32 %v708_v59 }
 0x94f   :  { %v1845_v61 = vpop.eup %1844 }
 0x950   :  { %v712_v8 = vsel %vm2017_vm5, %v1843_v60, %v1845_v61 }
 0x951   :  { %715 = vrot.lane.b32.xlu1 %v712_v8, %s1927_s15  ;;  %v713_v11 = vmul.f32 %v712_v8, %v2154_v18 }
 0x9b2   :  { %v643_v62 = vpop.permute.xlu0 %642 }
 0x9b3   :  { %v645_v63 = vmul.f32 %v643_v62, %v639_v58 }
 0x9b5   :  { %647 = vrot.lane.b32.xlu0 %v645_v63, %s1928_s16 }
 0x9c3   :  { %v716_v0 = vpop.permute.xlu1 %715 }
 0x9c4   :  { %v718_v2 = vmul.f32 %v716_v0, %v712_v8 }
 0x9c6   :  { %720 = vrot.lane.b32.xlu1 %v718_v2, %s1928_s16 }
 0xa27   :  { %v648_v5 = vpop.permute.xlu0 %647 }
 0xa28   :  { %v2192_v7 = vadd.f32 %v648_v5, %v640_v4 }
 0xa2a   :  { %1846 = vtanh.f32 %v2192_v7 }
 0xa37   :  { %v1847_v10 = vpop.eup %1846 }
 0xa38   :  { %v721_v12 = vpop.permute.xlu1 %720  ;;  %653 = vrot.lane.b32.xlu0 %v1847_v10, %s1927_s15 }
 0xa39   :  { %v2197_v13 = vadd.f32 %v721_v12, %v713_v11 }
 0xa3b   :  { %1848 = vtanh.f32 %v2197_v13 }
 0xa48   :  { %v1849_v14 = vpop.eup %1848 }
 0xa49   :  { %726 = vrot.lane.b32.xlu1 %v1849_v14, %s1927_s15 }
 0xaaa   :  { %v654_v16 = vpop.permute.xlu0 %653 }
 0xaab   :  { %v656_v15 = vmul.f32 %v654_v16, %v639_v58 }
 0xaad   :  { %v657_v17 = vpack.c.bf16 %v656_v15, %v656_v15 }
 0xaaf   :  { %734 = vrot.lane.b32.xlu0 %v657_v17, %s1928_s16  ;;  %v149_v17 = vadd.f32 %v2014_v9, %v2095_v48 }
 0xabb   :  { %v727_v19 = vpop.permute.xlu1 %726 }
 0xabc   :  { %v729_v20 = vmul.f32 %v727_v19, %v712_v8 }
 0xabe   :  { %v730_v23 = vpack.c.bf16 %v729_v20, %v729_v20 }
 0xac0   :  { %807 = vrot.lane.b32.xlu1 %v730_v23, %s1927_s15 }
 0xb21   :  { %v735_v18 = vpop.permute.xlu0 %734 }
 0xb22   :  { %1681 = vmatmul.mubr.msk.bf16.vlgmr.msra.gmra.mxu0 %vm193_vm6, %v735_v18 }
 0xb23   :  { %1685 = vmatpush3.bf16.msra.mxu0 %v2037_v33  ;;  %1692 = vmatprep.mubr.msk.bf16.mxu0 %vm1925_vm2, %v1924_v1 }
 0xb24   :  { %1686 = vmatprep.subr.bf16.mxu0 %v1924_v1 }
 0xb27   :  { %1687 = vmatpush3.bf16.msra.mxu0 %v2044_v34 }
 0xb28   :  { %1688 = vmatprep.subr.bf16.mxu0 %v1924_v1 }
 0xb2b   :  { %1689 = vmatpush3.bf16.msra.mxu0 %v2054_v35 }
 0xb2c   :  { %1690 = vmatprep.subr.bf16.mxu0 %v1924_v1 }
 0xb2f   :  { %1691 = vmatpush3.bf16.msra.mxu0 %v2062_v37 }
 0xb30   :  { %1716 = vmatprep.subr.bf16.mxu0 %v1924_v1 }
 0xb32   :  { %v808_v21 = vpop.permute.xlu1 %807 }
 0xb33   :  { %v810_v25 = vsel %vm193_vm6, %v735_v18, %v808_v21 }
 0xb34   :  { %1693 = vmatmul.mubr.msk.bf16.vlgmr.msra.gmra.mxu0 %vm366_vm7, %v810_v25 }
 0xb35   :  { %1717 = vmatpush3.bf16.msra.mxu0 %v1983_v3  ;;  %1720 = vmatprep.mubr.msk.bf16.mxu0 %vm1925_vm2, %v1924_v1 }
 0xb36   :  { %1718 = vmatprep.subr.bf16.mxu0 %v1924_v1 }
 0xb39   :  { %1719 = vmatpush3.bf16.msra.mxu0 %v1998_v6 }
 0xb3a   :  { %1724 = vmatprep.subr.bf16.mxu0 %v1924_v1 }
 0xbe2   :  { %v773_v27 = vpop.f32.mrf.mxu0 }
 0xbe3   :  { %v779_v28 = vadd.f32 %v773_v27, %v146_v26 }
 0xbe4   :  { %v1682_v24 = vpop.f32.mrf.mxu0 }
 0xbe5   :  { %v1505_v29 = vmul.f32 -1.442695, %v779_v28 }
 0xbe6   :  { %v776_v30 = vpop.f32.mrf.mxu0 }
 0xbe7   :  { %1850 = vpow2.f32 %v1505_v29 }
 0xbe8   :  { %v1683_v31 = vpop.f32.mrf.mxu0  ;;  %1852 = vtanh.f32 %v779_v28 }
 0xbf4   :  { %v1851_v32 = vpop.eup %1850  ;;  %v847_v36 = vpop.f32.mrf.mxu0 }
 0xbf5   :  { %v783_v38 = vadd.f32 1.0, %v1851_v32  ;;  %v848_v39 = vadd.f32 %v2101_v50, %v847_v36  ;;  %v1853_v46 = vpop.eup %1852 }
 0xbf6   :  { %v1694_v40 = vpop.f32.mrf.mxu0 }
 0xbf7   :  { %1854 = vrcp.f32 %v783_v38  ;;  %v1507_v41 = vmul.f32 -1.442695, %v848_v39 }
 0xbf8   :  { %v850_v42 = vpop.f32.mrf.mxu0 }
 0xbf9   :  { %1856 = vpow2.f32 %v1507_v41 }
 0xbfa   :  { %v1695_v44 = vpop.f32.mrf.mxu0  ;;  %1858 = vtanh.f32 %v848_v39 }
 0xc04   :  { %v1855_v49 = vpop.eup %1854 }
 0xc05   :  { %v787_v51 = vsel %vm2017_vm5, %v1853_v46, %v1855_v49 }
 0xc06   :  { %v1857_v52 = vpop.eup %1856  ;;  %790 = vrot.lane.b32.xlu0 %v787_v51, %s1927_s15  ;;  %v788_v60 = vmul.f32 %v787_v51, %v2192_v7 }
 0xc07   :  { %v856_v53 = vadd.f32 1.0, %v1857_v52  ;;  %v1859_v54 = vpop.eup %1858 }
 0xc09   :  { %1860 = vrcp.f32 %v856_v53 }
 0xc16   :  { %v1861_v55 = vpop.eup %1860 }
 0xc17   :  { %v860_v43 = vsel %vm2017_vm5, %v1859_v54, %v1861_v55 }
 0xc18   :  { %863 = vrot.lane.b32.xlu1 %v860_v43, %s1927_s15  ;;  %v861_v63 = vmul.f32 %v860_v43, %v2197_v13 }
 0xc78   :  { %v791_v56 = vpop.permute.xlu0 %790 }
 0xc79   :  { %v793_v57 = vmul.f32 %v791_v56, %v787_v51 }
 0xc7b   :  { %795 = vrot.lane.b32.xlu0 %v793_v57, %s1928_s16 }
 0xc8a   :  { %v864_v58 = vpop.permute.xlu1 %863 }
 0xc8b   :  { %v866_v59 = vmul.f32 %v864_v58, %v860_v43 }
 0xc8d   :  { %868 = vrot.lane.b32.xlu1 %v866_v59, %s1928_s16 }
 0xced   :  { %v796_v61 = vpop.permute.xlu0 %795 }
 0xcee   :  { %v2234_v8 = vadd.f32 %v796_v61, %v788_v60 }
 0xcf0   :  { %1862 = vtanh.f32 %v2234_v8 }
 0xcfd   :  { %v1863_v62 = vpop.eup %1862 }
 0xcfe   :  { %801 = vrot.lane.b32.xlu0 %v1863_v62, %s1927_s15 }
 0xcff   :  { %v869_v0 = vpop.permute.xlu1 %868 }
 0xd00   :  { %v2239_v2 = vadd.f32 %v869_v0, %v861_v63 }
 0xd02   :  { %1864 = vtanh.f32 %v2239_v2 }
 0xd0f   :  { %v1865_v4 = vpop.eup %1864 }
 0xd10   :  { %874 = vrot.lane.b32.xlu1 %v1865_v4, %s1927_s15  ;;  %v154_v4 = vadd.f32 %v2089_v45, %v2014_v9 }
 0xd70   :  { %v802_v5 = vpop.permute.xlu0 %801 }
 0xd71   :  { %v804_v7 = vmul.f32 %v802_v5, %v787_v51 }
 0xd73   :  { %v805_v10 = vpack.c.bf16 %v804_v7, %v804_v7 }
 0xd75   :  { %882 = vrot.lane.b32.xlu0 %v805_v10, %s1928_s16 }
 0xd82   :  { %v875_v11 = vpop.permute.xlu1 %874 }
 0xd83   :  { %v877_v12 = vmul.f32 %v875_v11, %v860_v43 }
 0xd85   :  { %v878_v14 = vpack.c.bf16 %v877_v12, %v877_v12 }
 0xd87   :  { %955 = vrot.lane.b32.xlu1 %v878_v14, %s1927_s15 }
 0xde7   :  { %v883_v13 = vpop.permute.xlu0 %882 }
 0xde8   :  { %1701 = vmatmul.mubr.msk.bf16.vlgmr.msra.gmra.mxu1 %vm193_vm6, %v883_v13 }
 0xde9   :  { %1705 = vmatpush3.bf16.msra.mxu1 %v2037_v33  ;;  %1712 = vmatprep.mubr.msk.bf16.mxu1 %vm1925_vm2, %v1924_v1 }
 0xdea   :  { %1706 = vmatprep.subr.bf16.mxu1 %v1924_v1 }
 0xded   :  { %1707 = vmatpush3.bf16.msra.mxu1 %v2044_v34 }
 0xdee   :  { %1708 = vmatprep.subr.bf16.mxu1 %v1924_v1 }
 0xdf1   :  { %1709 = vmatpush3.bf16.msra.mxu1 %v2054_v35 }
 0xdf2   :  { %1710 = vmatprep.subr.bf16.mxu1 %v1924_v1 }
 0xdf5   :  { %1711 = vmatpush3.bf16.msra.mxu1 %v2062_v37 }
 0xdf6   :  { %1736 = vmatprep.subr.bf16.mxu1 %v1924_v1 }
 0xdf9   :  { %v956_v16 = vpop.permute.xlu1 %955 }
 0xdfa   :  { %v958_v15 = vsel %vm193_vm6, %v883_v13, %v956_v16 }
 0xdfb   :  { %1713 = vmatmul.mubr.msk.bf16.vlgmr.msra.gmra.mxu1 %vm366_vm7, %v958_v15 }
 0xdfc   :  { %1737 = vmatpush3.bf16.msra.mxu1 %v1983_v3  ;;  %1740 = vmatprep.mubr.msk.bf16.mxu1 %vm1925_vm2, %v1924_v1 }
 0xdfd   :  { %1738 = vmatprep.subr.bf16.mxu1 %v1924_v1 }
 0xe00   :  { %1739 = vmatpush3.bf16.msra.mxu1 %v1998_v6 }
 0xe01   :  { %1744 = vmatprep.subr.bf16.mxu1 %v1924_v1 }
 0xea8   :  { %v921_v19 = vpop.f32.mrf.mxu1 }
 0xea9   :  { %v927_v20 = vadd.f32 %v921_v19, %v149_v17 }
 0xeaa   :  { %v1702_v23 = vpop.f32.mrf.mxu1 }
 0xeab   :  { %v1509_v18 = vmul.f32 -1.442695, %v927_v20 }
 0xeac   :  { %v924_v21 = vpop.f32.mrf.mxu1 }
 0xead   :  { %1866 = vpow2.f32 %v1509_v18 }
 0xeae   :  { %v1703_v25 = vpop.f32.mrf.mxu1  ;;  %1868 = vtanh.f32 %v927_v20 }
 0xeba   :  { %v1867_v3 = vpop.eup %1866 }
 0xebb   :  { %v931_v26 = vadd.f32 1.0, %v1867_v3  ;;  %v995_v27 = vpop.f32.mrf.mxu1  ;;  %v1869_v48 = vpop.eup %1868 }
 0xebc   :  { %v996_v28 = vadd.f32 %v2101_v50, %v995_v27 }
 0xebd   :  { %1870 = vrcp.f32 %v931_v26  ;;  %v1714_v6 = vpop.f32.mrf.mxu1 }
 0xebe   :  { %v1511_v24 = vmul.f32 -1.442695, %v996_v28 }
 0xebf   :  { %v998_v29 = vpop.f32.mrf.mxu1 }
 0xec0   :  { %1872 = vpow2.f32 %v1511_v24 }
 0xec1   :  { %v1715_v30 = vpop.f32.mrf.mxu1  ;;  %1874 = vtanh.f32 %v996_v28 }
 0xeca   :  { %v1871_v31 = vpop.eup %1870 }
 0xecb   :  { %v935_v32 = vsel %vm2017_vm5, %v1869_v48, %v1871_v31 }
 0xecc   :  { %938 = vrot.lane.b32.xlu0 %v935_v32, %s1927_s15  ;;  %v936_v51 = vmul.f32 %v935_v32, %v2234_v8 }
 0xecd   :  { %v1873_v36 = vpop.eup %1872 }
 0xece   :  { %v1004_v38 = vadd.f32 1.0, %v1873_v36  ;;  %v1875_v39 = vpop.eup %1874 }
 0xed0   :  { %1876 = vrcp.f32 %v1004_v38 }
 0xedd   :  { %v1877_v40 = vpop.eup %1876 }
 0xede   :  { %v1008_v41 = vsel %vm2017_vm5, %v1875_v39, %v1877_v40 }
 0xedf   :  { %1011 = vrot.lane.b32.xlu1 %v1008_v41, %s1927_s15  ;;  %v1009_v55 = vmul.f32 %v1008_v41, %v2239_v2 }
 0xf3e   :  { %v939_v42 = vpop.permute.xlu0 %938 }
 0xf3f   :  { %v941_v44 = vmul.f32 %v939_v42, %v935_v32 }
 0xf41   :  { %943 = vrot.lane.b32.xlu0 %v941_v44, %s1928_s16 }
 0xf51   :  { %v1012_v46 = vpop.permute.xlu1 %1011 }
 0xf52   :  { %v1014_v49 = vmul.f32 %v1012_v46, %v1008_v41 }
 0xf54   :  { %1016 = vrot.lane.b32.xlu1 %v1014_v49, %s1928_s16 }
 0xfb3   :  { %v944_v52 = vpop.permute.xlu0 %943 }
 0xfb4   :  { %v2276_v53 = vadd.f32 %v944_v52, %v936_v51 }
 0xfb6   :  { %1878 = vtanh.f32 %v2276_v53 }
 0xfc3   :  { %v1879_v54 = vpop.eup %1878 }
 0xfc4   :  { %949 = vrot.lane.b32.xlu0 %v1879_v54, %s1927_s15 }
 0xfc6   :  { %v1017_v43 = vpop.permute.xlu1 %1016 }
 0xfc7   :  { %v2281_v56 = vadd.f32 %v1017_v43, %v1009_v55 }
 0xfc9   :  { %1880 = vtanh.f32 %v2281_v56 }
 0xfd6   :  { %v1881_v57 = vpop.eup %1880 }
 0xfd7   :  { %1022 = vrot.lane.b32.xlu1 %v1881_v57, %s1927_s15 }
0x1036   :  { %v950_v58 = vpop.permute.xlu0 %949 }
0x1037   :  { %v952_v59 = vmul.f32 %v950_v58, %v935_v32 }
0x1039   :  { %v953_v60 = vpack.c.bf16 %v952_v59, %v952_v59 }
0x103b   :  { %1030 = vrot.lane.b32.xlu0 %v953_v60, %s1928_s16 }
0x1049   :  { %v1023_v61 = vpop.permute.xlu1 %1022 }
0x104a   :  { %v1025_v8 = vmul.f32 %v1023_v61, %v1008_v41 }
0x104c   :  { %v1026_v62 = vpack.c.bf16 %v1025_v8, %v1025_v8 }
0x104e   :  { %1103 = vrot.lane.b32.xlu1 %v1026_v62, %s1927_s15 }
0x10ad   :  { %v1031_v63 = vpop.permute.xlu0 %1030 }
0x10ae   :  { %1721 = vmatmul.mubr.msk.bf16.vlgmr.msra.gmra.mxu0 %vm193_vm6, %v1031_v63 }
0x10af   :  { %1725 = vmatpush3.bf16.msra.mxu0 %v2037_v33  ;;  %1732 = vmatprep.mubr.msk.bf16.mxu0 %vm1925_vm2, %v1924_v1 }
0x10b0   :  { %1726 = vmatprep.subr.bf16.mxu0 %v1924_v1 }
0x10b3   :  { %1727 = vmatpush3.bf16.msra.mxu0 %v2044_v34 }
0x10b4   :  { %1728 = vmatprep.subr.bf16.mxu0 %v1924_v1 }
0x10b7   :  { %1729 = vmatpush3.bf16.msra.mxu0 %v2054_v35 }
0x10b8   :  { %1730 = vmatprep.subr.bf16.mxu0 %v1924_v1 }
0x10bb   :  { %1731 = vmatpush3.bf16.msra.mxu0 %v2062_v37 }
0x10bc   :  { %1756 = vmatprep.subr.bf16.mxu0 %v1924_v1 }
0x10c0   :  { %v1104_v0 = vpop.permute.xlu1 %1103 }
0x10c1   :  { %v1106_v2 = vsel %vm193_vm6, %v1031_v63, %v1104_v0 }
0x10c2   :  { %1733 = vmatmul.mubr.msk.bf16.vlgmr.msra.gmra.mxu0 %vm366_vm7, %v1106_v2 }
0x10c3   :  { %1757 = vmatpush3.bf16.msra.mxu0 %v2037_v33  ;;  %1764 = vmatprep.mubr.msk.bf16.mxu0 %vm1925_vm2, %v1924_v1 }
0x10c4   :  { %1758 = vmatprep.subr.bf16.mxu0 %v1924_v1 }
0x10c7   :  { %1759 = vmatpush3.bf16.msra.mxu0 %v2044_v34 }
0x10c8   :  { %1760 = vmatprep.subr.bf16.mxu0 %v1924_v1 }
0x10cb   :  { %1761 = vmatpush3.bf16.msra.mxu0 %v2054_v35 }
0x10cc   :  { %1762 = vmatprep.subr.bf16.mxu0 %v1924_v1 }
0x10cf   :  { %1763 = vmatpush3.bf16.msra.mxu0 %v2062_v37 }
0x116e   :  { %v1069_v5 = vpop.f32.mrf.mxu0 }
0x116f   :  { %v1075_v7 = vadd.f32 %v1069_v5, %v154_v4 }
0x1170   :  { %v1722_v10 = vpop.f32.mrf.mxu0 }
0x1171   :  { %v1513_v11 = vmul.f32 -1.442695, %v1075_v7 }
0x1172   :  { %v1072_v12 = vpop.f32.mrf.mxu0 }
0x1173   :  { %1882 = vpow2.f32 %v1513_v11 }
0x1174   :  { %v1723_v14 = vpop.f32.mrf.mxu0  ;;  %1884 = vtanh.f32 %v1075_v7 }
0x1180   :  { %v1883_v13 = vpop.eup %1882 }
0x1181   :  { %v1079_v16 = vadd.f32 1.0, %v1883_v13  ;;  %v1885_v9 = vpop.eup %1884 }
0x1182   :  { %v1143_v15 = vpop.f32.mrf.mxu0 }
0x1183   :  { %1886 = vrcp.f32 %v1079_v16  ;;  %v1144_v17 = vadd.f32 %v2101_v50, %v1143_v15 }
0x1184   :  { %v1734_v19 = vpop.f32.mrf.mxu0 }
0x1185   :  { %v1515_v20 = vmul.f32 -1.442695, %v1144_v17 }
0x1186   :  { %v1146_v23 = vpop.f32.mrf.mxu0 }
0x1187   :  { %1888 = vpow2.f32 %v1515_v20 }
0x1188   :  { %v1735_v18 = vpop.f32.mrf.mxu0  ;;  %1890 = vtanh.f32 %v1144_v17 }
0x1190   :  { %v1887_v45 = vpop.eup %1886 }
0x1191   :  { %v1083_v21 = vsel %vm2017_vm5, %v1885_v9, %v1887_v45 }
0x1192   :  { %1086 = vrot.lane.b32.xlu0 %v1083_v21, %s1927_s15  ;;  %v1084_v48 = vmul.f32 %v1083_v21, %v2276_v53 }
0x1194   :  { %v1889_v25 = vpop.eup %1888 }
0x1195   :  { %v1152_v3 = vadd.f32 1.0, %v1889_v25  ;;  %v1891_v26 = vpop.eup %1890 }
0x1197   :  { %1892 = vrcp.f32 %v1152_v3 }
0x11a4   :  { %v1893_v27 = vpop.eup %1892 }
0x11a5   :  { %v1156_v28 = vsel %vm2017_vm5, %v1891_v26, %v1893_v27 }
0x11a6   :  { %1159 = vrot.lane.b32.xlu1 %v1156_v28, %s1927_s15  ;;  %v1157_v38 = vmul.f32 %v1156_v28, %v2281_v56 }
0x1204   :  { %v1087_v6 = vpop.permute.xlu0 %1086 }
0x1205   :  { %v1089_v24 = vmul.f32 %v1087_v6, %v1083_v21 }
0x1207   :  { %1091 = vrot.lane.b32.xlu0 %v1089_v24, %s1928_s16 }
0x1218   :  { %v1160_v29 = vpop.permute.xlu1 %1159 }
0x1219   :  { %v1162_v30 = vmul.f32 %v1160_v29, %v1156_v28 }
0x121b   :  { %1164 = vrot.lane.b32.xlu1 %v1162_v30, %s1928_s16 }
0x1279   :  { %v1092_v31 = vpop.permute.xlu0 %1091 }
0x127a   :  { %v2321_v32 = vadd.f32 %v1092_v31, %v1084_v48  ;;  %v1923_v31 = vld [vmem:[%s2396_s5] ss:$0 sm:$0xff] }
0x127c   :  { %1894 = vtanh.f32 %v2321_v32 }
0x1289   :  { %v1895_v36 = vpop.eup %1894 }
0x128a   :  { %1097 = vrot.lane.b32.xlu0 %v1895_v36, %s1927_s15 }
0x128d   :  { %v1165_v39 = vpop.permute.xlu1 %1164 }
0x128e   :  { %v2326_v40 = vadd.f32 %v1165_v39, %v1157_v38 }
0x1290   :  { %1896 = vtanh.f32 %v2326_v40 }
0x129d   :  { %v1897_v41 = vpop.eup %1896 }
0x129e   :  { %1170 = vrot.lane.b32.xlu1 %v1897_v41, %s1927_s15 }
0x12fc   :  { %v1098_v42 = vpop.permute.xlu0 %1097 }
0x12fd   :  { %v1100_v44 = vmul.f32 %v1098_v42, %v1083_v21 }
0x12ff   :  { %v1101_v46 = vpack.c.bf16 %v1100_v44, %v1100_v44 }
0x1301   :  { %1178 = vrot.lane.b32.xlu0 %v1101_v46, %s1928_s16 }
0x1310   :  { %v1171_v49 = vpop.permute.xlu1 %1170 }
0x1311   :  { %v1173_v51 = vmul.f32 %v1171_v49, %v1156_v28 }
0x1313   :  { %v1174_v52 = vpack.c.bf16 %v1173_v51, %v1173_v51 }
0x1315   :  { %1251 = vrot.lane.b32.xlu1 %v1174_v52, %s1927_s15 }
0x1373   :  { %v1179_v53 = vpop.permute.xlu0 %1178 }
0x1374   :  { %1741 = vmatmul.mubr.msk.bf16.vlgmr.msra.gmra.mxu1 %vm193_vm6, %v1179_v53 }
0x1375   :  { %1745 = vmatpush3.bf16.msra.mxu1 %v2037_v33  ;;  %1752 = vmatprep.mubr.msk.bf16.mxu1 %vm1925_vm2, %v1924_v1 }
0x1376   :  { %1746 = vmatprep.subr.bf16.mxu1 %v1924_v1 }
0x1379   :  { %1747 = vmatpush3.bf16.msra.mxu1 %v2044_v34  ;;  %v1922_v34 = vld [vmem:[%s2394_s3] ss:$0 sm:$0xff] }
0x137a   :  { %1748 = vmatprep.subr.bf16.mxu1 %v1924_v1 }
0x137d   :  { %1749 = vmatpush3.bf16.msra.mxu1 %v2054_v35  ;;  %v157_v35 = vadd.f32 %v1922_v34, %v2093_v47  ;;  %v1792_v34 = vld [vmem:[%s2397_s6 + $0x8] sm:$0xff]  }
0x137e   :  { %1750 = vmatprep.subr.bf16.mxu1 %v1924_v1 }
0x1381   :  { %1751 = vmatpush3.bf16.msra.mxu1 %v2062_v37 }
0x1382   :  { %1768 = vmatprep.subr.bf16.mxu1 %v1924_v1 }
0x1387   :  { %v1252_v54 = vpop.permute.xlu1 %1251 }
0x1388   :  { %v1254_v33 = vsel %vm193_vm6, %v1179_v53, %v1252_v54 }
0x1389   :  { %1753 = vmatmul.mubr.msk.bf16.vlgmr.msra.gmra.mxu1 %vm366_vm7, %v1254_v33 }
0x138a   :  { %1772 = vmatprep.mubr.msk.bf16.mxu1 %vm1925_vm2, %v1924_v1  ;;  %1769 = vmatpush3.bf16.msra.mxu1 %v1792_v34 }
0x138b   :  { %1770 = vmatprep.subr.bf16.mxu1 %v1924_v1 }
0x138e   :  { %1771 = vmatpush3.bf16.msra.mxu1 %v1793_v22 }
0x1434   :  { %v1217_v55 = vpop.f32.mrf.mxu1 }
0x1435   :  { %v1223_v43 = vadd.f32 %v1217_v55, %v157_v35 }
0x1436   :  { %v1742_v56 = vpop.f32.mrf.mxu1 }
0x1437   :  { %v1517_v37 = vmul.f32 -1.442695, %v1223_v43 }
0x1438   :  { %v1220_v57 = vpop.f32.mrf.mxu1 }
0x1439   :  { %1898 = vpow2.f32 %v1517_v37  ;;  %v1522_v57 = vld [vmem:[%s2398_s7] ss:$0 sm:$0xff] }
0x143a   :  { %v1743_v58 = vpop.f32.mrf.mxu1  ;;  %1900 = vtanh.f32 %v1223_v43 }
0x1446   :  { %v1899_v59 = vpop.eup %1898 }
0x1447   :  { %v1227_v60 = vadd.f32 1.0, %v1899_v59  ;;  %v1901_v47 = vpop.eup %1900 }
0x1449   :  { %1902 = vrcp.f32 %v1227_v60  ;;  %v1291_v61 = vpop.f32.mrf.mxu1 }
0x144a   :  { %v1292_v8 = vadd.f32 %v2101_v50, %v1291_v61 }
0x144b   :  { %v1754_v62 = vpop.f32.mrf.mxu1 }
0x144c   :  { %v1519_v63 = vmul.f32 -1.442695, %v1292_v8 }
0x144d   :  { %v1294_v0 = vpop.f32.mrf.mxu1 }
0x144e   :  { %1904 = vpow2.f32 %v1519_v63 }
0x144f   :  { %v1755_v2 = vpop.f32.mrf.mxu1  ;;  %1906 = vtanh.f32 %v1292_v8 }
0x1456   :  { %v1903_v4 = vpop.eup %1902 }
0x1457   :  { %v1231_v5 = vsel %vm2017_vm5, %v1901_v47, %v1903_v4 }
0x1458   :  { %1234 = vrot.lane.b32.xlu0 %v1231_v5, %s1927_s15  ;;  %v1232_v17 = vmul.f32 %v1231_v5, %v2321_v32 }
0x145b   :  { %v1905_v7 = vpop.eup %1904 }
0x145c   :  { %v1300_v10 = vadd.f32 1.0, %v1905_v7  ;;  %v1907_v11 = vpop.eup %1906 }
0x145e   :  { %1908 = vrcp.f32 %v1300_v10 }
0x146b   :  { %v1909_v12 = vpop.eup %1908 }
0x146c   :  { %v1304_v50 = vsel %vm2017_vm5, %v1907_v11, %v1909_v12 }
0x146d   :  { %1307 = vrot.lane.b32.xlu1 %v1304_v50, %s1927_s15  ;;  %v1305_v18 = vmul.f32 %v1304_v50, %v2326_v40 }
0x14ca   :  { %v1235_v14 = vpop.permute.xlu0 %1234 }
0x14cb   :  { %v1237_v13 = vmul.f32 %v1235_v14, %v1231_v5 }
0x14cd   :  { %1239 = vrot.lane.b32.xlu0 %v1237_v13, %s1928_s16 }
0x14df   :  { %v1308_v16 = vpop.permute.xlu1 %1307 }
0x14e0   :  { %v1310_v15 = vmul.f32 %v1308_v16, %v1304_v50 }
0x14e2   :  { %1312 = vrot.lane.b32.xlu1 %v1310_v15, %s1928_s16 }
0x153f   :  { %v1240_v19 = vpop.permute.xlu0 %1239 }
0x1540   :  { %v1242_v20 = vadd.f32 %v1240_v19, %v1232_v17 }
0x1542   :  { %1910 = vtanh.f32 %v1242_v20 }
0x154f   :  { %v1911_v23 = vpop.eup %1910 }
0x1550   :  { %1245 = vrot.lane.b32.xlu0 %v1911_v23, %s1927_s15 }
0x1554   :  { %v1313_v9 = vpop.permute.xlu1 %1312 }
0x1555   :  { %v1315_v45 = vadd.f32 %v1313_v9, %v1305_v18 }
0x1557   :  { %1912 = vtanh.f32 %v1315_v45 }
0x1564   :  { %v1913_v21 = vpop.eup %1912 }
0x1565   :  { %1318 = vrot.lane.b32.xlu1 %v1913_v21, %s1927_s15 }
0x15c2   :  { %v1246_v25 = vpop.permute.xlu0 %1245 }
0x15c3   :  { %v1248_v3 = vmul.f32 %v1246_v25, %v1231_v5 }
0x15c5   :  { %v1249_v26 = vpack.c.bf16 %v1248_v3, %v1248_v3 }
0x15c7   :  { %1324 = vrot.lane.b32.xlu0 %v1249_v26, %s1928_s16 }
0x15d7   :  { %v1319_v27 = vpop.permute.xlu1 %1318 }
0x15d8   :  { %v1321_v28 = vmul.f32 %v1319_v27, %v1304_v50 }
0x15da   :  { %v1322_v6 = vpack.c.bf16 %v1321_v28, %v1321_v28 }
0x15dc   :  { %1327 = vrot.lane.b32.xlu1 %v1322_v6, %s1927_s15 }
0x1639   :  { %v1325_v24 = vpop.permute.xlu0 %1324 }
0x164e   :  { %v1328_v29 = vpop.permute.xlu1 %1327 }
0x164f   :  { %v1331_v30 = vsel %vm193_vm6, %v1325_v24, %v1328_v29 }
0x1650   :  { %1765 = vmatmul.mubr.msk.bf16.vlgmr.msra.gmra.mxu0 %vm366_vm7, %v1331_v30 }
0x1710   :  { %v1368_v48 = vpop.f32.mrf.mxu0 }
0x1711   :  { %v1369_v32 = vadd.f32 %v1923_v31, %v1368_v48 }
0x1712   :  { %v1766_v36 = vpop.f32.mrf.mxu0 }
0x1713   :  { %v1521_v38 = vmul.f32 -1.442695, %v1369_v32 }
0x1714   :  { %v1371_v39 = vpop.f32.mrf.mxu0 }
0x1715   :  { %1914 = vpow2.f32 %v1521_v38 }
0x1716   :  { %v1767_v40 = vpop.f32.mrf.mxu0  ;;  %1916 = vtanh.f32 %v1369_v32 }
0x1722   :  { %v1915_v41 = vpop.eup %1914 }
0x1723   :  { %v1377_v42 = vadd.f32 1.0, %v1915_v41  ;;  %v1917_v44 = vpop.eup %1916 }
0x1725   :  { %1918 = vrcp.f32 %v1377_v42 }
0x1732   :  { %v1919_v46 = vpop.eup %1918 }
0x1733   :  { %v1381_v49 = vsel %vm2017_vm5, %v1917_v44, %v1919_v46 }
0x1734   :  { %1384 = vrot.lane.b32.xlu0 %v1381_v49, %s1927_s15  ;;  %v1382_v53 = vmul.f32 %v1381_v49, %v1315_v45 }
0x17a6   :  { %v1385_v51 = vpop.permute.xlu0 %1384 }
0x17a7   :  { %v1387_v52 = vmul.f32 %v1385_v51, %v1381_v49 }
0x17a9   :  { %1389 = vrot.lane.b32.xlu1 %v1387_v52, %s1928_s16 }
0x181b   :  { %v1390_v54 = vpop.permute.xlu1 %1389 }
0x181c   :  { %v1392_v33 = vadd.f32 %v1390_v54, %v1382_v53 }
0x181e   :  { %1920 = vtanh.f32 %v1392_v33 }
0x182b   :  { %v1921_v35 = vpop.eup %1920 }
0x182c   :  { %1395 = vrot.lane.b32.xlu0 %v1921_v35, %s1927_s15 }
0x189e   :  { %v1396_v55 = vpop.permute.xlu0 %1395 }
0x189f   :  { %v1398_v43 = vmul.f32 %v1396_v55, %v1381_v49 }
0x18a1   :  { %v1399_v56 = vpack.c.bf16 %v1398_v43, %v1398_v43 }
0x18a3   :  { %1412 = vrot.lane.b32.xlu1 %v1399_v56, %s1928_s16 }
0x1915   :  { %v1413_v37 = vpop.permute.xlu1 %1412 }
0x1916   :  { %1773 = vmatmul.mubr.msk.bf16.vlgmr.msra.gmra.mxu1 %vm193_vm6, %v1413_v37 }
0x19d6   :  { %v1463_v58 = vpop.f32.mrf.mxu1 }
0x19d7   :  { %v1464_v59 = vadd.f32 %v1522_v57, %v1463_v58 }
0x19d8   :  { %v1774_v1 = vpop.f32.mrf.mxu1 }
0x19d9   :  { %1470 = vst.msk [vmem:[%s2399_s8] sm:$0xff] %vm1469_vm8, %v1464_v59 }
0x19da   :  { %v1466_v60 = vpop.f32.mrf.mxu1 }
0x19dc   :  { %v1775_v61 = vpop.f32.mrf.mxu1 }

</bundles_post_ra>
